<compile_context>
chip_gen: v7x
topology: tpu7x:2x2x1
jax: 0.10.0
libtpu: 0.0.40
codegen_flags: <defaults>
</compile_context>

<pallas_src>
import functools
import numpy as np
import jax
import jax.numpy as jnp
from jax import lax
from jax.experimental import pallas as pl
from jax.experimental.pallas import tpu as pltpu

EPS = 1e-5
# MXU operand dtype: bf16 is native on v6e/v7x; use jnp.float32 for tighter numerics.
MXU_DTYPE = jnp.bfloat16


def _bn_act(y, gamma, beta, relu):
    """Train-mode BatchNorm (+ optional ReLU) in channel-major layout.

    y: (C, NR) f32 — one channel per sublane row, pixels on lanes.
    gamma/beta: (C, 1) f32.
    One-pass stats (sum & sum-of-squares) folded into a single scale/shift apply.
    """
    inv_n = jnp.float32(1.0 / y.shape[1])
    mean = jnp.sum(y, axis=1, keepdims=True) * inv_n
    mean_sq = jnp.sum(y * y, axis=1, keepdims=True) * inv_n
    var = jnp.maximum(mean_sq - mean * mean, 0.0)     # clamp: one-pass var can dip < 0
    scale = gamma * lax.rsqrt(var + EPS)              # rsqrt rides the EUP slot
    shift = beta - mean * scale
    out = y * scale + shift
    return jnp.maximum(out, 0.0) if relu else out


def _resblk_kernel(W, Cmid, Cout,
                   x_ref, w1sc_ref, w2_ref, w3_ref, mask_ref, gam_ref, bet_ref,
                   o_ref):
    NR = x_ref.shape[1]

    # BN per-channel params arrive packed as two (2*Cmid+2*Cout, 1) arrays; all slice
    # boundaries (8, 16, 48) are multiples of 8 sublanes -> free.
    gam = gam_ref[...]
    bet = bet_ref[...]
    g1, be1 = gam[:Cmid], bet[:Cmid]
    g2, be2 = gam[Cmid:2 * Cmid], bet[Cmid:2 * Cmid]
    g3, be3 = gam[2 * Cmid:2 * Cmid + Cout], bet[2 * Cmid:2 * Cmid + Cout]
    gsc, besc = gam[2 * Cmid + Cout:], bet[2 * Cmid + Cout:]

    # ---- conv1 (1x1) and shortcut conv (1x1) fused into ONE MXU matmul ----
    # Conv biases omitted: train-mode BN mean-subtraction cancels them exactly.
    y = jnp.dot(w1sc_ref[...], x_ref[...], preferred_element_type=jnp.float32)  # (Cmid+Cout, NR)
    y1 = _bn_act(y[:Cmid, :], g1, be1, relu=True)                               # (Cmid, NR)
    # Park the shortcut branch in the output VMEM buffer immediately: frees its
    # 16-vreg live range across the conv2/conv3 section; read back once at the end.
    o_ref[...] = _bn_act(y[Cmid:, :], gsc, besc, relu=False)                    # (Cout, NR)

    # ---- conv2 (3x3, stride 1, pad 1) as ONE im2col matmul (K = 9*Cmid) ----
    # Each non-center tap = lane roll of y1 (XLU op) * precomputed border mask
    # (static host-side data; every lane the roll wraps fails the hh+dy / ww+dx bounds
    # test, including cross-image wrap), then cast so the (9*Cmid, NR) im2col is
    # materialized directly in the MXU dtype. No padded scratch, no in-kernel iota.
    y1_mx = y1.astype(MXU_DTYPE)
    masks = mask_ref[...]                                   # (8, NR) f32, non-center taps
    taps = []
    for k in range(9):
        dy, dx = k // 3 - 1, k % 3 - 1
        s = dy * W + dx                                     # read offset along flat pixels
        if s == 0:
            taps.append(y1_mx)
        else:
            j = k if k < 4 else k - 1                       # mask row (center skipped)
            t = pltpu.roll(y1, shift=(-s) % NR, axis=1)     # t[:, i] = y1[:, (i+s) % NR]
            taps.append((t * masks[j:j + 1, :]).astype(MXU_DTYPE))
    im2col = jnp.concatenate(taps, axis=0)                                      # (9*Cmid, NR)
    y2 = jnp.dot(w2_ref[...], im2col, preferred_element_type=jnp.float32)       # (Cmid, NR)
    y2 = _bn_act(y2, g2, be2, relu=True)

    # ---- conv3 (1x1) -> bn3 (no relu) ----
    y3 = jnp.dot(w3_ref[...], y2.astype(MXU_DTYPE),
                 preferred_element_type=jnp.float32)                            # (Cout, NR)
    y3 = _bn_act(y3, g3, be3, relu=False)

    # ---- residual add: read the parked shortcut back (one lane-dense 64 KiB load) ----
    o_ref[...] = o_ref[...] + y3


def resblk_pallas(x_nchw, p):
    """x_nchw: (N, Cin, H, W) float32. p: PyTorch-layout params (conv weights OIHW)."""
    N, Cin, H, W = x_nchw.shape
    Cmid = p["w1"].shape[0]
    Cout = p["w3"].shape[0]
    NR = N * H * W

    # Channel-major activations (C, N*H*W): pixels on the 128-wide lane axis.
    # x only feeds the fused conv1/shortcut matmul -> cast to the MXU dtype here
    # (halves its DMA and removes the in-kernel cast; numerically identical).
    # TODO(synk): for chained ResBlks keep activations channel-major between blocks so
    # these wrapper transposes (extra HBM passes at production sizes) disappear.
    x_cm = jnp.transpose(x_nchw, (1, 0, 2, 3)).reshape(Cin, NR).astype(MXU_DTYPE)

    def colvec(v):                                            # (C,) -> (C, 1) f32
        return v.reshape(-1, 1).astype(jnp.float32)

    # Weights as channel-major (C_out_rows, C_in_cols) matrices in the MXU dtype.
    w1 = p["w1"][:, :, 0, 0]                                  # (Cmid, Cin)
    wsc = p["wsc"][:, :, 0, 0]                                # (Cout, Cin)
    w1sc = jnp.concatenate([w1, wsc], axis=0).astype(MXU_DTYPE)       # (Cmid+Cout, Cin)
    w2 = jnp.transpose(p["w2"], (0, 2, 3, 1)).reshape(Cmid, 9 * Cmid).astype(MXU_DTYPE)
    w3 = p["w3"][:, :, 0, 0].astype(MXU_DTYPE)                # (Cout, Cmid)

    # BN per-channel params packed into two aligned (2*Cmid+2*Cout, 1) arrays.
    gam = jnp.concatenate([colvec(p["g1"]), colvec(p["g2"]),
                           colvec(p["g3"]), colvec(p["gsc"])], axis=0)
    bet = jnp.concatenate([colvec(p["be1"]), colvec(p["be2"]),
                           colvec(p["be3"]), colvec(p["besc"])], axis=0)

    # Static border masks for the 8 non-center 3x3 taps (pure numpy at trace time).
    cols = np.arange(NR)
    hh = (cols // W) % H
    ww = cols % W
    rows = []
    for k in range(9):
        if k == 4:
            continue
        dy, dx = k // 3 - 1, k % 3 - 1
        rows.append(((hh + dy >= 0) & (hh + dy < H) &
                     (ww + dx >= 0) & (ww + dx < W)).astype(np.float32))
    masks = jnp.asarray(np.stack(rows, axis=0))               # (8, NR) f32

    args = (x_cm, w1sc, w2, w3, masks, gam, bet)

    def full_spec(a):
        nd = a.ndim
        return pl.BlockSpec(a.shape, lambda i, _nd=nd: (0,) * _nd)

    kernel = functools.partial(_resblk_kernel, W, Cmid, Cout)

    mm_flops = 2 * NR * ((Cmid + Cout) * Cin + Cmid * 9 * Cmid + Cout * Cmid)
    ew_flops = 10 * NR * (2 * Cmid + 2 * Cout)                # BN stats/apply, relu, add
    bytes_accessed = int(sum(int(a.size) * a.dtype.itemsize for a in args)
                         + NR * Cout * 4)

    out_cm = pl.pallas_call(
        kernel,
        out_shape=jax.ShapeDtypeStruct((Cout, NR), jnp.float32),
        grid=(1,),
        in_specs=[full_spec(a) for a in args],
        out_specs=pl.BlockSpec((Cout, NR), lambda i: (0, 0)),
        compiler_params=pltpu.CompilerParams(
            dimension_semantics=("arbitrary",),
            vmem_limit_bytes=32 * 1024 * 1024),
        cost_estimate=pl.CostEstimate(
            flops=int(mm_flops + ew_flops),
            transcendentals=int(2 * (Cmid + Cout)),
            bytes_accessed=bytes_accessed),
    )(*args)

    # TODO(synk): production tiling — tile the pixel axis with a "parallel" grid (>=2
    # blocks on v7x to use both TensorCores) and switch train-mode BN to a two-pass
    # partial-sum/apply scheme; size NR_tile against v7x's 64 MiB VMEM vs 128 MiB on
    # v5e/v6e (where larger tiles / deeper pl.Buffered pipelining pay off). A single
    # block is optimal at these toy sizes.
    return jnp.transpose(out_cm.reshape(Cout, N, H, W), (1, 0, 2, 3))    # -> NCHW


# ------------------------- pure-JAX reference (for validation) -------------------------
def _bn_train_nchw(y, gamma, beta):
    mean = jnp.mean(y, axis=(0, 2, 3), keepdims=True)
    var = jnp.mean((y - mean) ** 2, axis=(0, 2, 3), keepdims=True)
    return ((y - mean) * lax.rsqrt(var + EPS) * gamma[None, :, None, None]
            + beta[None, :, None, None])


def _conv_nchw(x, w, b, pad):
    y = lax.conv_general_dilated(x, w, (1, 1), [(pad, pad), (pad, pad)],
                                 dimension_numbers=("NCHW", "OIHW", "NCHW"),
                                 precision=lax.Precision.HIGHEST)
    return y + b[None, :, None, None]


def resblk_reference(x, p):
    out = jnp.maximum(_bn_train_nchw(_conv_nchw(x, p["w1"], p["b1"], 0), p["g1"], p["be1"]), 0.0)
    out = jnp.maximum(_bn_train_nchw(_conv_nchw(out, p["w2"], p["b2"], 1), p["g2"], p["be2"]), 0.0)
    out = _bn_train_nchw(_conv_nchw(out, p["w3"], p["b3"], 0), p["g3"], p["be3"])
    sc = _bn_train_nchw(_conv_nchw(x, p["wsc"], p["bsc"], 0), p["gsc"], p["besc"])
    return sc + out


# ---------------------------------------- main ----------------------------------------
if __name__ == "__main__":
    N, CH_IN, CH_OUT, H, W = 2, 8, 32, 16, 16
    CMID = CH_OUT // 4

    ks = jax.random.split(jax.random.PRNGKey(0), 17)

    def nrm(k, shape, scale=0.1):
        return (scale * jax.random.normal(k, shape)).astype(jnp.float32)

    # Parameters in PyTorch layout (conv weights OIHW); deterministic synthetic init.
    # Biases are kept in the reference (the kernel drops them — BN cancels them exactly).
    params = {
        "w1": nrm(ks[0], (CMID, CH_IN, 1, 1)),  "b1": nrm(ks[1], (CMID,)),
        "g1": 1.0 + nrm(ks[2], (CMID,)),        "be1": nrm(ks[3], (CMID,)),
        "w2": nrm(ks[4], (CMID, CMID, 3, 3)),   "b2": nrm(ks[5], (CMID,)),
        "g2": 1.0 + nrm(ks[6], (CMID,)),        "be2": nrm(ks[7], (CMID,)),
        "w3": nrm(ks[8], (CH_OUT, CMID, 1, 1)), "b3": nrm(ks[9], (CH_OUT,)),
        "g3": 1.0 + nrm(ks[10], (CH_OUT,)),     "be3": nrm(ks[11], (CH_OUT,)),
        "wsc": nrm(ks[12], (CH_OUT, CH_IN, 1, 1)), "bsc": nrm(ks[13], (CH_OUT,)),
        "gsc": 1.0 + nrm(ks[14], (CH_OUT,)),    "besc": nrm(ks[15], (CH_OUT,)),
    }

    x = jax.random.normal(ks[16], (N, CH_IN, H, W), dtype=jnp.float32)

    out = jax.block_until_ready(resblk_pallas(x, params))
    ref = jax.block_until_ready(resblk_reference(x, params))

    assert out.shape == (N, CH_OUT, H, W), out.shape
    # bf16 MXU operands (K=72 conv2 accumulation dominates the error) vs the f32
    # reference need a loose tolerance; rerun with MXU_DTYPE=jnp.float32 for 1e-3.
    tol = 1e-1 if MXU_DTYPE == jnp.bfloat16 else 1e-3
    np.testing.assert_allclose(np.asarray(out), np.asarray(ref), atol=tol, rtol=tol)
    print("KERNEL_OK")
</pallas_src>

<mosaic_0001>
module attributes {stable_mosaic.version = 11 : i64} {
  func.func @_resblk_kernel(%arg0: i32, %arg1: memref<8x512xbf16, #tpu.memory_space<vmem>>, %arg2: memref<40x8xbf16, #tpu.memory_space<vmem>>, %arg3: memref<8x72xbf16, #tpu.memory_space<vmem>>, %arg4: memref<32x8xbf16, #tpu.memory_space<vmem>>, %arg5: memref<8x512xf32, #tpu.memory_space<vmem>>, %arg6: memref<80x1xf32, #tpu.memory_space<vmem>>, %arg7: memref<80x1xf32, #tpu.memory_space<vmem>>, %arg8: memref<32x512xf32, #tpu.memory_space<vmem>>) attributes {dimension_semantics = [#tpu.dimension_semantics<arbitrary>], iteration_bounds = array<i64: 1>, scalar_prefetch = 0 : i64, scratch_operands = 0 : i64, tpu.core_type = #tpu.core_type<tc>, window_params = [{pipeline_mode = #tpu.pipeline_mode<synchronous>, transform_indices = @transform_0, window_bounds = array<i64: 8, 512>}, {pipeline_mode = #tpu.pipeline_mode<synchronous>, transform_indices = @transform_1, window_bounds = array<i64: 40, 8>}, {pipeline_mode = #tpu.pipeline_mode<synchronous>, transform_indices = @transform_2, window_bounds = array<i64: 8, 72>}, {pipeline_mode = #tpu.pipeline_mode<synchronous>, transform_indices = @transform_3, window_bounds = array<i64: 32, 8>}, {pipeline_mode = #tpu.pipeline_mode<synchronous>, transform_indices = @transform_4, window_bounds = array<i64: 8, 512>}, {pipeline_mode = #tpu.pipeline_mode<synchronous>, transform_indices = @transform_5, window_bounds = array<i64: 80, 1>}, {pipeline_mode = #tpu.pipeline_mode<synchronous>, transform_indices = @transform_6, window_bounds = array<i64: 80, 1>}, {pipeline_mode = #tpu.pipeline_mode<synchronous>, transform_indices = @transform_7, window_bounds = array<i64: 32, 512>}]} {
    %c0 = arith.constant 0 : index
    %c0_0 = arith.constant 0 : index
    %0 = vector.load %arg6[%c0, %c0_0] : memref<80x1xf32, #tpu.memory_space<vmem>>, vector<80x1xf32>
    %c0_1 = arith.constant 0 : index
    %c0_2 = arith.constant 0 : index
    %1 = vector.load %arg7[%c0_1, %c0_2] : memref<80x1xf32, #tpu.memory_space<vmem>>, vector<80x1xf32>
    %2 = vector.extract_strided_slice %0 {offsets = [0, 0], sizes = [8, 1], strides = [1, 1]} : vector<80x1xf32> to vector<8x1xf32>
    %3 = vector.extract_strided_slice %1 {offsets = [0, 0], sizes = [8, 1], strides = [1, 1]} : vector<80x1xf32> to vector<8x1xf32>
    %4 = vector.extract_strided_slice %0 {offsets = [8, 0], sizes = [8, 1], strides = [1, 1]} : vector<80x1xf32> to vector<8x1xf32>
    %5 = vector.extract_strided_slice %1 {offsets = [8, 0], sizes = [8, 1], strides = [1, 1]} : vector<80x1xf32> to vector<8x1xf32>
    %6 = vector.extract_strided_slice %0 {offsets = [16, 0], sizes = [32, 1], strides = [1, 1]} : vector<80x1xf32> to vector<32x1xf32>
    %7 = vector.extract_strided_slice %1 {offsets = [16, 0], sizes = [32, 1], strides = [1, 1]} : vector<80x1xf32> to vector<32x1xf32>
    %8 = vector.extract_strided_slice %0 {offsets = [48, 0], sizes = [32, 1], strides = [1, 1]} : vector<80x1xf32> to vector<32x1xf32>
    %9 = vector.extract_strided_slice %1 {offsets = [48, 0], sizes = [32, 1], strides = [1, 1]} : vector<80x1xf32> to vector<32x1xf32>
    %c0_3 = arith.constant 0 : index
    %c0_4 = arith.constant 0 : index
    %10 = vector.load %arg2[%c0_3, %c0_4] : memref<40x8xbf16, #tpu.memory_space<vmem>>, vector<40x8xbf16>
    %c0_5 = arith.constant 0 : index
    %c0_6 = arith.constant 0 : index
    %11 = vector.load %arg1[%c0_5, %c0_6] : memref<8x512xbf16, #tpu.memory_space<vmem>>, vector<8x512xbf16>
    %cst = arith.constant dense<0.000000e+00> : vector<40x512xf32>
    %12 = tpu.matmul %10, %11, %cst {dimension_numbers = #tpu.dot_dimension_numbers<[1], [0], [0], [1], [0, 0, 1, 1], [], []>} : vector<40x8xbf16>, vector<8x512xbf16>, vector<40x512xf32> -> vector<40x512xf32>
    %13 = vector.extract_strided_slice %12 {offsets = [0, 0], sizes = [8, 512], strides = [1, 1]} : vector<40x512xf32> to vector<8x512xf32>
    %cst_7 = arith.constant dense<0.000000e+00> : vector<8xf32>
    %14 = vector.multi_reduction <add>, %13, %cst_7 [1] : vector<8x512xf32> to vector<8xf32>
    %15 = vector.shape_cast %14 : vector<8xf32> to vector<8x1xf32>
    %cst_8 = arith.constant 0.001953125 : f32
    %16 = vector.broadcast %cst_8 : f32 to vector<8x1xf32>
    %17 = arith.mulf %15, %16 : vector<8x1xf32>
    %18 = arith.mulf %13, %13 : vector<8x512xf32>
    %cst_9 = arith.constant dense<0.000000e+00> : vector<8xf32>
    %19 = vector.multi_reduction <add>, %18, %cst_9 [1] : vector<8x512xf32> to vector<8xf32>
    %20 = vector.shape_cast %19 : vector<8xf32> to vector<8x1xf32>
    %cst_10 = arith.constant 0.001953125 : f32
    %21 = vector.broadcast %cst_10 : f32 to vector<8x1xf32>
    %22 = arith.mulf %20, %21 : vector<8x1xf32>
    %23 = arith.mulf %17, %17 : vector<8x1xf32>
    %24 = arith.subf %22, %23 : vector<8x1xf32>
    %cst_11 = arith.constant 0.000000e+00 : f32
    %25 = vector.broadcast %cst_11 : f32 to vector<8x1xf32>
    %26 = arith.maximumf %24, %25 : vector<8x1xf32>
    %cst_12 = arith.constant 9.99999974E-6 : f32
    %27 = vector.broadcast %cst_12 : f32 to vector<8x1xf32>
    %28 = arith.addf %26, %27 : vector<8x1xf32>
    %29 = math.rsqrt %28 : vector<8x1xf32>
    %30 = arith.mulf %2, %29 : vector<8x1xf32>
    %31 = arith.mulf %17, %30 : vector<8x1xf32>
    %32 = arith.subf %3, %31 : vector<8x1xf32>
    %33 = vector.broadcast %30 : vector<8x1xf32> to vector<8x512xf32>
    %34 = arith.mulf %13, %33 : vector<8x512xf32>
    %35 = vector.broadcast %32 : vector<8x1xf32> to vector<8x512xf32>
    %36 = arith.addf %34, %35 : vector<8x512xf32>
    %cst_13 = arith.constant 0.000000e+00 : f32
    %37 = vector.broadcast %cst_13 : f32 to vector<8x512xf32>
    %38 = arith.maximumf %36, %37 : vector<8x512xf32>
    %39 = vector.extract_strided_slice %12 {offsets = [8, 0], sizes = [32, 512], strides = [1, 1]} : vector<40x512xf32> to vector<32x512xf32>
    %cst_14 = arith.constant dense<0.000000e+00> : vector<32xf32>
    %40 = vector.multi_reduction <add>, %39, %cst_14 [1] : vector<32x512xf32> to vector<32xf32>
    %41 = vector.shape_cast %40 : vector<32xf32> to vector<32x1xf32>
    %cst_15 = arith.constant 0.001953125 : f32
    %42 = vector.broadcast %cst_15 : f32 to vector<32x1xf32>
    %43 = arith.mulf %41, %42 : vector<32x1xf32>
    %44 = arith.mulf %39, %39 : vector<32x512xf32>
    %cst_16 = arith.constant dense<0.000000e+00> : vector<32xf32>
    %45 = vector.multi_reduction <add>, %44, %cst_16 [1] : vector<32x512xf32> to vector<32xf32>
    %46 = vector.shape_cast %45 : vector<32xf32> to vector<32x1xf32>
    %cst_17 = arith.constant 0.001953125 : f32
    %47 = vector.broadcast %cst_17 : f32 to vector<32x1xf32>
    %48 = arith.mulf %46, %47 : vector<32x1xf32>
    %49 = arith.mulf %43, %43 : vector<32x1xf32>
    %50 = arith.subf %48, %49 : vector<32x1xf32>
    %cst_18 = arith.constant 0.000000e+00 : f32
    %51 = vector.broadcast %cst_18 : f32 to vector<32x1xf32>
    %52 = arith.maximumf %50, %51 : vector<32x1xf32>
    %cst_19 = arith.constant 9.99999974E-6 : f32
    %53 = vector.broadcast %cst_19 : f32 to vector<32x1xf32>
    %54 = arith.addf %52, %53 : vector<32x1xf32>
    %55 = math.rsqrt %54 : vector<32x1xf32>
    %56 = arith.mulf %8, %55 : vector<32x1xf32>
    %57 = arith.mulf %43, %56 : vector<32x1xf32>
    %58 = arith.subf %9, %57 : vector<32x1xf32>
    %59 = vector.broadcast %56 : vector<32x1xf32> to vector<32x512xf32>
    %60 = arith.mulf %39, %59 : vector<32x512xf32>
    %61 = vector.broadcast %58 : vector<32x1xf32> to vector<32x512xf32>
    %62 = arith.addf %60, %61 : vector<32x512xf32>
    %c0_20 = arith.constant 0 : index
    %c0_21 = arith.constant 0 : index
    %63 = vector.load %arg8[%c0_20, %c0_21] : memref<32x512xf32, #tpu.memory_space<vmem>>, vector<32x512xf32>
    tpu.vector_store %arg8[%c0_20, %c0_21], %62 {strides = array<i32>} : memref<32x512xf32, #tpu.memory_space<vmem>>, vector<32x512xf32>,
    %64 = arith.truncf %38 : vector<8x512xf32> to vector<8x512xbf16>
    %c0_22 = arith.constant 0 : index
    %c0_23 = arith.constant 0 : index
    %65 = vector.load %arg5[%c0_22, %c0_23] : memref<8x512xf32, #tpu.memory_space<vmem>>, vector<8x512xf32>
    %c17_i32 = arith.constant 17 : i32
    %66 = tpu.dynamic_rotate %38 by %c17_i32 dim 1 : vector<8x512xf32>, i32 -> vector<8x512xf32>
    %67 = vector.extract_strided_slice %65 {offsets = [0, 0], sizes = [1, 512], strides = [1, 1]} : vector<8x512xf32> to vector<1x512xf32>
    %68 = vector.broadcast %67 : vector<1x512xf32> to vector<8x512xf32>
    %69 = arith.mulf %66, %68 : vector<8x512xf32>
    %70 = arith.truncf %69 : vector<8x512xf32> to vector<8x512xbf16>
    %c16_i32 = arith.constant 16 : i32
    %71 = tpu.dynamic_rotate %38 by %c16_i32 dim 1 : vector<8x512xf32>, i32 -> vector<8x512xf32>
    %72 = vector.extract_strided_slice %65 {offsets = [1, 0], sizes = [1, 512], strides = [1, 1]} : vector<8x512xf32> to vector<1x512xf32>
    %73 = vector.broadcast %72 : vector<1x512xf32> to vector<8x512xf32>
    %74 = arith.mulf %71, %73 : vector<8x512xf32>
    %75 = arith.truncf %74 : vector<8x512xf32> to vector<8x512xbf16>
    %c15_i32 = arith.constant 15 : i32
    %76 = tpu.dynamic_rotate %38 by %c15_i32 dim 1 : vector<8x512xf32>, i32 -> vector<8x512xf32>
    %77 = vector.extract_strided_slice %65 {offsets = [2, 0], sizes = [1, 512], strides = [1, 1]} : vector<8x512xf32> to vector<1x512xf32>
    %78 = vector.broadcast %77 : vector<1x512xf32> to vector<8x512xf32>
    %79 = arith.mulf %76, %78 : vector<8x512xf32>
    %80 = arith.truncf %79 : vector<8x512xf32> to vector<8x512xbf16>
    %c1_i32 = arith.constant 1 : i32
    %81 = tpu.dynamic_rotate %38 by %c1_i32 dim 1 : vector<8x512xf32>, i32 -> vector<8x512xf32>
    %82 = vector.extract_strided_slice %65 {offsets = [3, 0], sizes = [1, 512], strides = [1, 1]} : vector<8x512xf32> to vector<1x512xf32>
    %83 = vector.broadcast %82 : vector<1x512xf32> to vector<8x512xf32>
    %84 = arith.mulf %81, %83 : vector<8x512xf32>
    %85 = arith.truncf %84 : vector<8x512xf32> to vector<8x512xbf16>
    %c511_i32 = arith.constant 511 : i32
    %86 = tpu.dynamic_rotate %38 by %c511_i32 dim 1 : vector<8x512xf32>, i32 -> vector<8x512xf32>
    %87 = vector.extract_strided_slice %65 {offsets = [4, 0], sizes = [1, 512], strides = [1, 1]} : vector<8x512xf32> to vector<1x512xf32>
    %88 = vector.broadcast %87 : vector<1x512xf32> to vector<8x512xf32>
    %89 = arith.mulf %86, %88 : vector<8x512xf32>
    %90 = arith.truncf %89 : vector<8x512xf32> to vector<8x512xbf16>
    %c497_i32 = arith.constant 497 : i32
    %91 = tpu.dynamic_rotate %38 by %c497_i32 dim 1 : vector<8x512xf32>, i32 -> vector<8x512xf32>
    %92 = vector.extract_strided_slice %65 {offsets = [5, 0], sizes = [1, 512], strides = [1, 1]} : vector<8x512xf32> to vector<1x512xf32>
    %93 = vector.broadcast %92 : vector<1x512xf32> to vector<8x512xf32>
    %94 = arith.mulf %91, %93 : vector<8x512xf32>
    %95 = arith.truncf %94 : vector<8x512xf32> to vector<8x512xbf16>
    %c496_i32 = arith.constant 496 : i32
    %96 = tpu.dynamic_rotate %38 by %c496_i32 dim 1 : vector<8x512xf32>, i32 -> vector<8x512xf32>
    %97 = vector.extract_strided_slice %65 {offsets = [6, 0], sizes = [1, 512], strides = [1, 1]} : vector<8x512xf32> to vector<1x512xf32>
    %98 = vector.broadcast %97 : vector<1x512xf32> to vector<8x512xf32>
    %99 = arith.mulf %96, %98 : vector<8x512xf32>
    %100 = arith.truncf %99 : vector<8x512xf32> to vector<8x512xbf16>
    %c495_i32 = arith.constant 495 : i32
    %101 = tpu.dynamic_rotate %38 by %c495_i32 dim 1 : vector<8x512xf32>, i32 -> vector<8x512xf32>
    %102 = vector.extract_strided_slice %65 {offsets = [7, 0], sizes = [1, 512], strides = [1, 1]} : vector<8x512xf32> to vector<1x512xf32>
    %103 = vector.broadcast %102 : vector<1x512xf32> to vector<8x512xf32>
    %104 = arith.mulf %101, %103 : vector<8x512xf32>
    %105 = arith.truncf %104 : vector<8x512xf32> to vector<8x512xbf16>
    %106 = tpu.concatenate %70, %75, %80, %85, %64, %90, %95, %100, %105 in 0 : vector<8x512xbf16>, vector<8x512xbf16>, vector<8x512xbf16>, vector<8x512xbf16>, vector<8x512xbf16>, vector<8x512xbf16>, vector<8x512xbf16>, vector<8x512xbf16>, vector<8x512xbf16> -> vector<72x512xbf16>
    %c0_24 = arith.constant 0 : index
    %c0_25 = arith.constant 0 : index
    %107 = vector.load %arg3[%c0_24, %c0_25] : memref<8x72xbf16, #tpu.memory_space<vmem>>, vector<8x72xbf16>
    %cst_26 = arith.constant dense<0.000000e+00> : vector<8x512xf32>
    %108 = tpu.matmul %107, %106, %cst_26 {dimension_numbers = #tpu.dot_dimension_numbers<[1], [0], [0], [1], [0, 0, 1, 1], [], []>} : vector<8x72xbf16>, vector<72x512xbf16>, vector<8x512xf32> -> vector<8x512xf32>
    %cst_27 = arith.constant dense<0.000000e+00> : vector<8xf32>
    %109 = vector.multi_reduction <add>, %108, %cst_27 [1] : vector<8x512xf32> to vector<8xf32>
    %110 = vector.shape_cast %109 : vector<8xf32> to vector<8x1xf32>
    %cst_28 = arith.constant 0.001953125 : f32
    %111 = vector.broadcast %cst_28 : f32 to vector<8x1xf32>
    %112 = arith.mulf %110, %111 : vector<8x1xf32>
    %113 = arith.mulf %108, %108 : vector<8x512xf32>
    %cst_29 = arith.constant dense<0.000000e+00> : vector<8xf32>
    %114 = vector.multi_reduction <add>, %113, %cst_29 [1] : vector<8x512xf32> to vector<8xf32>
    %115 = vector.shape_cast %114 : vector<8xf32> to vector<8x1xf32>
    %cst_30 = arith.constant 0.001953125 : f32
    %116 = vector.broadcast %cst_30 : f32 to vector<8x1xf32>
    %117 = arith.mulf %115, %116 : vector<8x1xf32>
    %118 = arith.mulf %112, %112 : vector<8x1xf32>
    %119 = arith.subf %117, %118 : vector<8x1xf32>
    %cst_31 = arith.constant 0.000000e+00 : f32
    %120 = vector.broadcast %cst_31 : f32 to vector<8x1xf32>
    %121 = arith.maximumf %119, %120 : vector<8x1xf32>
    %cst_32 = arith.constant 9.99999974E-6 : f32
    %122 = vector.broadcast %cst_32 : f32 to vector<8x1xf32>
    %123 = arith.addf %121, %122 : vector<8x1xf32>
    %124 = math.rsqrt %123 : vector<8x1xf32>
    %125 = arith.mulf %4, %124 : vector<8x1xf32>
    %126 = arith.mulf %112, %125 : vector<8x1xf32>
    %127 = arith.subf %5, %126 : vector<8x1xf32>
    %128 = vector.broadcast %125 : vector<8x1xf32> to vector<8x512xf32>
    %129 = arith.mulf %108, %128 : vector<8x512xf32>
    %130 = vector.broadcast %127 : vector<8x1xf32> to vector<8x512xf32>
    %131 = arith.addf %129, %130 : vector<8x512xf32>
    %cst_33 = arith.constant 0.000000e+00 : f32
    %132 = vector.broadcast %cst_33 : f32 to vector<8x512xf32>
    %133 = arith.maximumf %131, %132 : vector<8x512xf32>
    %c0_34 = arith.constant 0 : index
    %c0_35 = arith.constant 0 : index
    %134 = vector.load %arg4[%c0_34, %c0_35] : memref<32x8xbf16, #tpu.memory_space<vmem>>, vector<32x8xbf16>
    %135 = arith.truncf %133 : vector<8x512xf32> to vector<8x512xbf16>
    %cst_36 = arith.constant dense<0.000000e+00> : vector<32x512xf32>
    %136 = tpu.matmul %134, %135, %cst_36 {dimension_numbers = #tpu.dot_dimension_numbers<[1], [0], [0], [1], [0, 0, 1, 1], [], []>} : vector<32x8xbf16>, vector<8x512xbf16>, vector<32x512xf32> -> vector<32x512xf32>
    %cst_37 = arith.constant dense<0.000000e+00> : vector<32xf32>
    %137 = vector.multi_reduction <add>, %136, %cst_37 [1] : vector<32x512xf32> to vector<32xf32>
    %138 = vector.shape_cast %137 : vector<32xf32> to vector<32x1xf32>
    %cst_38 = arith.constant 0.001953125 : f32
    %139 = vector.broadcast %cst_38 : f32 to vector<32x1xf32>
    %140 = arith.mulf %138, %139 : vector<32x1xf32>
    %141 = arith.mulf %136, %136 : vector<32x512xf32>
    %cst_39 = arith.constant dense<0.000000e+00> : vector<32xf32>
    %142 = vector.multi_reduction <add>, %141, %cst_39 [1] : vector<32x512xf32> to vector<32xf32>
    %143 = vector.shape_cast %142 : vector<32xf32> to vector<32x1xf32>
    %cst_40 = arith.constant 0.001953125 : f32
    %144 = vector.broadcast %cst_40 : f32 to vector<32x1xf32>
    %145 = arith.mulf %143, %144 : vector<32x1xf32>
    %146 = arith.mulf %140, %140 : vector<32x1xf32>
    %147 = arith.subf %145, %146 : vector<32x1xf32>
    %cst_41 = arith.constant 0.000000e+00 : f32
    %148 = vector.broadcast %cst_41 : f32 to vector<32x1xf32>
    %149 = arith.maximumf %147, %148 : vector<32x1xf32>
    %cst_42 = arith.constant 9.99999974E-6 : f32
    %150 = vector.broadcast %cst_42 : f32 to vector<32x1xf32>
    %151 = arith.addf %149, %150 : vector<32x1xf32>
    %152 = math.rsqrt %151 : vector<32x1xf32>
    %153 = arith.mulf %6, %152 : vector<32x1xf32>
    %154 = arith.mulf %140, %153 : vector<32x1xf32>
    %155 = arith.subf %7, %154 : vector<32x1xf32>
    %156 = vector.broadcast %153 : vector<32x1xf32> to vector<32x512xf32>
    %157 = arith.mulf %136, %156 : vector<32x512xf32>
    %158 = vector.broadcast %155 : vector<32x1xf32> to vector<32x512xf32>
    %159 = arith.addf %157, %158 : vector<32x512xf32>
    %c0_43 = arith.constant 0 : index
    %c0_44 = arith.constant 0 : index
    %160 = vector.load %arg8[%c0_43, %c0_44] : memref<32x512xf32, #tpu.memory_space<vmem>>, vector<32x512xf32>
    %161 = arith.addf %160, %159 : vector<32x512xf32>
    %c0_45 = arith.constant 0 : index
    %c0_46 = arith.constant 0 : index
    %162 = vector.load %arg8[%c0_45, %c0_46] : memref<32x512xf32, #tpu.memory_space<vmem>>, vector<32x512xf32>
    tpu.vector_store %arg8[%c0_45, %c0_46], %161 {strides = array<i32>} : memref<32x512xf32, #tpu.memory_space<vmem>>, vector<32x512xf32>,
    return
  }
  func.func @transform_0(%arg0: i32) -> (i32, i32) {
    %c0_i32 = arith.constant 0 : i32
    %c0_i32_0 = arith.constant 0 : i32
    %c0_i32_1 = arith.constant 0 : i32
    return %c0_i32, %c0_i32_0 : i32, i32
  }
  func.func @transform_1(%arg0: i32) -> (i32, i32) {
    %c0_i32 = arith.constant 0 : i32
    %c0_i32_0 = arith.constant 0 : i32
    %c0_i32_1 = arith.constant 0 : i32
    return %c0_i32, %c0_i32_0 : i32, i32
  }
  func.func @transform_2(%arg0: i32) -> (i32, i32) {
    %c0_i32 = arith.constant 0 : i32
    %c0_i32_0 = arith.constant 0 : i32
    %c0_i32_1 = arith.constant 0 : i32
    return %c0_i32, %c0_i32_0 : i32, i32
  }
  func.func @transform_3(%arg0: i32) -> (i32, i32) {
    %c0_i32 = arith.constant 0 : i32
    %c0_i32_0 = arith.constant 0 : i32
    %c0_i32_1 = arith.constant 0 : i32
    return %c0_i32, %c0_i32_0 : i32, i32
  }
  func.func @transform_4(%arg0: i32) -> (i32, i32) {
    %c0_i32 = arith.constant 0 : i32
    %c0_i32_0 = arith.constant 0 : i32
    %c0_i32_1 = arith.constant 0 : i32
    return %c0_i32, %c0_i32_0 : i32, i32
  }
  func.func @transform_5(%arg0: i32) -> (i32, i32) {
    %c0_i32 = arith.constant 0 : i32
    %c0_i32_0 = arith.constant 0 : i32
    %c0_i32_1 = arith.constant 0 : i32
    return %c0_i32, %c0_i32_0 : i32, i32
  }
  func.func @transform_6(%arg0: i32) -> (i32, i32) {
    %c0_i32 = arith.constant 0 : i32
    %c0_i32_0 = arith.constant 0 : i32
    %c0_i32_1 = arith.constant 0 : i32
    return %c0_i32, %c0_i32_0 : i32, i32
  }
  func.func @transform_7(%arg0: i32) -> (i32, i32) {
    %c0_i32 = arith.constant 0 : i32
    %c0_i32_0 = arith.constant 0 : i32
    %c0_i32_1 = arith.constant 0 : i32
    return %c0_i32, %c0_i32_0 : i32, i32
  }
}

</mosaic_0001>

<bundles_post_ra>
// kernel: tpu_custom_call.1
= control target key start
LH: loop header
LB: loop body
LE: loop exit
PB: predicated region body
PF: predicated region fallthrough
CT: control target
= control target key end

     0   :  { %vm88_vm0 = vcmask 1043456   ;;  %v1468_v6 = vmov 0   ;;  %vm78_vm1 = vcmask 64512   ;;  %s2109_s0 = inlined_call_operand.vmem [shape: bf16[8,512], index: 0, kind: input, shape index: {}]   ;;  %s2110_s1 = inlined_call_operand.vmem [shape: bf16[40,8], index: 1, kind: input, shape index: {}]   ;;  %s2111_s2 = inlined_call_operand.vmem [shape: bf16[8,72], index: 2, kind: input, shape index: {}]   ;;  %s2112_s3 = inlined_call_operand.vmem [shape: bf16[32,8], index: 3, kind: input, shape index: {}]   ;;  %s2113_s4 = inlined_call_operand.vmem [shape: f32[8,512], index: 4, kind: input, shape index: {}]   ;;  %s2114_s5 = inlined_call_operand.vmem [shape: f32[80,1], index: 5, kind: input, shape index: {}]   ;;  %s2115_s6 = inlined_call_operand.vmem [shape: f32[80,1], index: 6, kind: input, shape index: {}]   ;;  %s2116_s7 = inlined_call_operand.hbm [shape: f32[32,512], index: 7, kind: output, shape index: {}]  }
   0x1   :  { %v53_v0 = vld [vmem:[%s2109_s0] sm:$0xff]  ;;  %v54_v1 = vld [vmem:[%s2109_s0 + $0x8] sm:$0xff]  ;;  %133 = vmatprep.mubr.bf16.mxu0 %v1468_v6  ;;  %194 = vmatprep.mubr.bf16.mxu1 %v1468_v6 }
   0x2   :  { %v1378_v2 = vcombine.high %v53_v0, %v53_v0  ;;  %v1380_v3 = vcombine.high %v54_v1, %v54_v1  ;;  %v1377_v4 = vcombine.low %v53_v0, %v53_v0  ;;  %v1379_v5 = vcombine.low %v54_v1, %v54_v1  ;;  %v1419_v7 = vld [vmem:[%s2110_s1] sm:$0xff]   ;;  %1413 = vset.pattern.permute.xlu1 %v1468_v6 }
   0x4   :  { %1381 = vmatprep.subr.msk.bf16.mxu0 %vm88_vm0, %v1378_v2  ;;  %1385 = vmatprep.subr.msk.bf16.mxu1 %vm88_vm0, %v1380_v3  ;;  %v90_v8 = vsel %vm88_vm0, %v1377_v4, 0  ;;  %v96_v9 = vsel %vm88_vm0, %v1379_v5, 0 }
   0x5   :  { %102 = vmatpush1.bf16.msra.mxu0 %v90_v8  ;;  %163 = vmatpush1.bf16.msra.mxu1 %v96_v9 }
   0x6   :  { %12 = vsyncpa [#allocation3], 0  ;;  %1414 = vset.pattern.permute.xlu0 %v1468_v6  ;;  %v28_v46 = vld [vmem:[%s2114_s5] sm:$0xff]  ;;  %s1469_s10 = smov 16   ;;  %s1470_s11 = smov 1   ;;  %v1420_v2 = vld [vmem:[%s2110_s1 + $0x8] sm:$0xff]   ;;  %v469_v4 = vlaneseq }
   0x7   :  { %v38_v49 = vld [vmem:[%s2115_s6] sm:$0xff]  ;;  %s1471_s12 = smov 17   ;;  %s1472_s13 = smov 15   ;;  %v1421_v3 = vld [vmem:[%s2110_s1 + $0x10] ss:$0 sps:$4 sm:$0xff]   ;;  %vm856_vm10 = vcmask 588800  }
   0x8   :  { %1382 = vmatmul.mubr.msk.bf16.vlgmr.msra.gmra.mrb[0].mxu0 %vm78_vm1, %v1419_v7  ;;  %1386 = vmatmul.mubr.msk.bf16.vlgmr.msra.gmra.mrb[0].mxu1 %vm78_vm1, %v1419_v7  ;;  %s1473_s14 = smov 127   ;;  %s1474_s15 = smov 112   ;;  %v1625_v5 = vshrl.u32 %v469_v4, 7  ;;  %v1627_v7 = vand.u32 127, %v469_v4 }
   0x9   :  { %143 = vmatprep.mubr.bf16.mxu0 %v1468_v6  ;;  %204 = vmatprep.mubr.bf16.mxu1 %v1468_v6  ;;  %s1475_s16 = smov 113   ;;  %s1476_s19 = smov 111  }
   0xa   :  { %v515_v9 = vsub.s32 1, %v1625_v5  ;;  %vm508_vm2 = vcmp.lt.s32.totalorder %v1627_v7, 16  ;;  %vm471_vm3 = vcmp.lt.s32.totalorder %v1627_v7, 17  ;;  %vm582_vm4 = vcmp.lt.s32.totalorder %v1627_v7, 1 }
   0xb   :  { %vm545_vm5 = vcmp.lt.s32.totalorder %v1627_v7, 15  ;;  %vm619_vm6 = vcmp.lt.s32.totalorder %v1627_v7, 127  ;;  %vm693_vm7 = vcmp.lt.s32.totalorder %v1627_v7, 112  ;;  %vm656_vm8 = vcmp.lt.s32.totalorder %v1627_v7, 113 }
   0xc   :  { %vm730_vm9 = vcmp.lt.s32.totalorder %v1627_v7, 111  ;;  %v855_v7 = vld [vmem:[%s2111_s2] sm:$0xf] }
  0x10   :  { %1383 = vmatmul.mubr.msk.bf16.gmra.mrb[4].mxu0 %vm78_vm1, %v1420_v2  ;;  %1387 = vmatmul.mubr.msk.bf16.gmra.mrb[4].mxu1 %vm78_vm1, %v1420_v2 }
  0x11   :  { %153 = vmatprep.mubr.bf16.mxu0 %v1468_v6  ;;  %214 = vmatprep.mubr.bf16.mxu1 %v1468_v6 }
  0x18   :  { %1384 = vmatmul.mubr.msk.bf16.gmra.mrb[8].mxu0 %vm78_vm1, %v1421_v3  ;;  %1388 = vmatmul.mubr.msk.bf16.gmra.mrb[8].mxu1 %vm78_vm1, %v1421_v3 }
  0x19   :  { %904 = vmatprep.mubr.bf16.mxu0 %v1468_v6  ;;  %945 = vmatprep.mubr.bf16.mxu1 %v1468_v6 }
  0xdb   :  { %v135_v10 = vpop.f32.mrb[0].mxu0  ;;  %v196_v11 = vpop.f32.mrb[0].mxu1 }
  0xdc   :  { %v229_v12 = vmul.f32 %v135_v10, %v135_v10  ;;  %v137_v13 = vpop.f32.mrb[1].mxu0  ;;  %v198_v14 = vpop.f32.mrb[1].mxu1  ;;  %v231_v15 = vmul.f32 %v196_v11, %v196_v11 }
  0xdd   :  { %v223_v16 = vadd.f32 %v137_v13, %v135_v10  ;;  %v230_v17 = vmul.f32 %v137_v13, %v137_v13  ;;  %v1541_v18 = vpop.f32.mrb[2].mxu0  ;;  %v1543_v19 = vpop.f32.mrb[2].mxu1  ;;  %v232_v28 = vmul.f32 %v198_v14, %v198_v14 }
  0xde   :  { %v293_v20 = vmul.f32 %v1541_v18, %v1541_v18  ;;  %v1547_v21 = vpop.f32.mrb[3].mxu0  ;;  %v1549_v22 = vpop.f32.mrb[3].mxu1  ;;  %v295_v27 = vmul.f32 %v1543_v19, %v1543_v19 }
  0xdf   :  { %v269_v23 = vadd.f32 %v1547_v21, %v1541_v18  ;;  %v294_v24 = vmul.f32 %v1547_v21, %v1547_v21  ;;  %v224_v25 = vadd.f32 %v223_v16, %v196_v11  ;;  %v233_v26 = vadd.f32 %v230_v17, %v229_v12  ;;  %v1644_v16 = vld [vmem:[%s2113_s4] sm:$0xff] }
  0xe0   :  { %v296_v35 = vmul.f32 %v1549_v22, %v1549_v22  ;;  %v478_v17 = vsub.s32 0, %v1625_v5 }
  0xe1   :  { %v225_v29 = vadd.f32 %v224_v25, %v198_v14  ;;  %v234_v30 = vadd.f32 %v233_v26, %v231_v15  ;;  %v270_v31 = vadd.f32 %v269_v23, %v1543_v19  ;;  %v309_v32 = vadd.f32 %v294_v24, %v293_v20 }
  0xe2   :  { %v516_v23 = vrot.slane %v1644_v16, %v515_v9 }
  0xe3   :  { %226 = vadd.xlane.f32.xlu0 %v225_v29  ;;  %v235_v33 = vadd.f32 %v234_v30, %v232_v28  ;;  %v1559_v34 = vadd.f32 %v270_v31, %v1549_v22  ;;  %v310_v36 = vadd.f32 %v309_v32, %v295_v27 }
  0xe5   :  { %v1563_v37 = vadd.f32 %v310_v36, %v296_v35  ;;  %v1664_v36 = vld [vmem:[%s2113_s4 + $0x18] sm:$0xff] }
  0xe7   :  { %236 = vadd.xlane.f32.xlu0 %v235_v33  ;;  %v1659_v33 = vld [vmem:[%s2113_s4 + $0x10] sm:$0xff] }
 0x170   :  { %v227_v38 = vpop.xlane.xlu0 %226 }
 0x171   :  { %v228_v39 = vmul.f32 0.001953125, %v227_v38  ;;  %v479_v38 = vrot.slane %v1644_v16, %v478_v17 }
 0x173   :  { %v239_v41 = vmul.f32 %v228_v39, %v228_v39 }
 0x174   :  { %v237_v40 = vpop.xlane.xlu0 %236 }
 0x175   :  { %v238_v42 = vmul.f32 0.001953125, %v237_v40 }
 0x177   :  { %v240_v43 = vsub.f32 %v238_v42, %v239_v41 }
 0x179   :  { %v241_v44 = vmax.f32 %v240_v43, 0.0 }
 0x17b   :  { %v242_v45 = vadd.f32 1e-05, %v241_v44  ;;  %v487_v44 = vrot.slane %v1659_v33, %v478_v17 }
 0x17d   :  { %1424 = vrsqrt.f32 %v242_v45  ;;  %v491_v45 = vrot.slane %v1664_v36, %v478_v17 }
 0x187   :  { %v1425_v47 = vpop.eup %1424 }
 0x188   :  { %v244_v48 = vmul.f32 %v1425_v47, %v28_v46  ;;  %v524_v47 = vrot.slane %v1659_v33, %v515_v9 }
 0x18a   :  { %249 = vperm.xlu1 %1413, %v244_v48   ;;  %v245_v50 = vmul.f32 %v244_v48, %v228_v39 }
 0x18c   :  { %v246_v51 = vsub.f32 %v38_v49, %v245_v50 }
 0x18e   :  { %258 = vperm.xlu1 %1413, %v246_v51   ;;  %v528_v51 = vrot.slane %v1664_v36, %v515_v9 }
 0x209   :  { %v250_v52 = vpop.permute.xlu1 %249 }
 0x20a   :  { %v252_v53 = vmul.f32 %v250_v52, %v135_v10  ;;  %v253_v54 = vmul.f32 %v250_v52, %v137_v13  ;;  %v255_v56 = vmul.f32 %v250_v52, %v198_v14  ;;  %v254_v62 = vmul.f32 %v250_v52, %v196_v11  ;;  %v1633_v11 = vld [vmem:[%s2113_s4 + $0x8] sm:$0xff] }
 0x20b   :  { %v520_v12 = vrot.slane %v1633_v11, %v515_v9  ;;  %v483_v27 = vrot.slane %v1633_v11, %v478_v17  ;;  %v552_v9 = vsub.s32 2, %v1625_v5 }
 0x20d   :  { %v259_v55 = vpop.permute.xlu1 %258 }
 0x20e   :  { %v261_v57 = vadd.f32 %v259_v55, %v252_v53  ;;  %v262_v58 = vadd.f32 %v259_v55, %v253_v54  ;;  %v264_v59 = vadd.f32 %v259_v55, %v255_v56  ;;  %v263_v63 = vadd.f32 %v259_v55, %v254_v62 }
 0x210   :  { %v1571_v60 = vmax.f32 %v261_v57, 0.0  ;;  %v1573_v61 = vmax.f32 %v262_v58, 0.0  ;;  %v1577_v0 = vmax.f32 %v264_v59, 0.0  ;;  %v1581_v1 = vmax.f32 %v263_v63, 0.0 }
 0x211   :  { %v589_v57 = vsub.s32 3, %v1625_v5 }
 0x212   :  { %502 = vrot.lane.b32.xlu1 %v1573_v61, %s1469_s10  ;;  %500 = vrot.lane.b32.xlu0 %v1571_v60, %s1469_s10 }
 0x216   :  { %506 = vrot.lane.b32.xlu1 %v1577_v0, %s1469_s10  ;;  %574 = vrot.lane.b32.xlu0 %v1571_v60, %s1470_s11 }
 0x21a   :  { %461 = vrot.lane.b32.xlu1 %v1571_v60, %s1471_s12  ;;  %465 = vrot.lane.b32.xlu0 %v1581_v1, %s1471_s12 }
 0x21e   :  { %463 = vrot.lane.b32.xlu1 %v1573_v61, %s1471_s12  ;;  %537 = vrot.lane.b32.xlu0 %v1571_v60, %s1472_s13 }
 0x222   :  { %467 = vrot.lane.b32.xlu1 %v1577_v0, %s1471_s12  ;;  %543 = vrot.lane.b32.xlu0 %v1577_v0, %s1472_s13 }
 0x226   :  { %504 = vrot.lane.b32.xlu1 %v1581_v1, %s1469_s10  ;;  %613 = vrot.lane.b32.xlu0 %v1573_v61, %s1473_s14 }
 0x22a   :  { %576 = vrot.lane.b32.xlu1 %v1573_v61, %s1470_s11  ;;  %541 = vrot.lane.b32.xlu0 %v1581_v1, %s1472_s13 }
 0x22e   :  { %580 = vrot.lane.b32.xlu1 %v1577_v0, %s1470_s11  ;;  %617 = vrot.lane.b32.xlu0 %v1577_v0, %s1473_s14 }
 0x232   :  { %539 = vrot.lane.b32.xlu1 %v1573_v61, %s1472_s13  ;;  %689 = vrot.lane.b32.xlu0 %v1581_v1, %s1474_s15 }
 0x236   :  { %578 = vrot.lane.b32.xlu1 %v1581_v1, %s1470_s11  ;;  %650 = vrot.lane.b32.xlu0 %v1573_v61, %s1475_s16 }
 0x23a   :  { %615 = vrot.lane.b32.xlu1 %v1581_v1, %s1473_s14  ;;  %648 = vrot.lane.b32.xlu0 %v1571_v60, %s1475_s16 }
 0x23e   :  { %611 = vrot.lane.b32.xlu1 %v1571_v60, %s1473_s14  ;;  %654 = vrot.lane.b32.xlu0 %v1577_v0, %s1475_s16 }
 0x242   :  { %687 = vrot.lane.b32.xlu1 %v1573_v61, %s1474_s15  ;;  %724 = vrot.lane.b32.xlu0 %v1573_v61, %s1476_s19 }
 0x246   :  { %685 = vrot.lane.b32.xlu1 %v1571_v60, %s1474_s15  ;;  %728 = vrot.lane.b32.xlu0 %v1577_v0, %s1476_s19 }
 0x24a   :  { %652 = vrot.lane.b32.xlu1 %v1581_v1, %s1475_s16 }
 0x24e   :  { %691 = vrot.lane.b32.xlu1 %v1577_v0, %s1474_s15 }
 0x252   :  { %722 = vrot.lane.b32.xlu1 %v1571_v60, %s1476_s19 }
 0x256   :  { %726 = vrot.lane.b32.xlu1 %v1581_v1, %s1476_s19 }
 0x284   :  { %v503_v8 = vpop.permute.xlu1 %502  ;;  %v501_v10 = vpop.permute.xlu0 %500 }
 0x285   :  { %v511_v15 = vsel %vm508_vm2, %v501_v10, %v503_v8 }
 0x286   :  { %v530_v20 = vmul.f32 %v520_v12, %v511_v15  ;;  %v594_v15 = vrot.slane %v1633_v11, %v589_v57 }
 0x288   :  { %v507_v13 = vpop.permute.xlu1 %506  ;;  %v1637_v14 = vpop.permute.xlu0 %574  ;;  %v534_v28 = vpack.c.bf16 %v530_v20, %v530_v20 }
 0x289   :  { %v512_v26 = vsel %vm508_vm2, %v507_v13, %v501_v10 }
 0x28a   :  { %v529_v29 = vmul.f32 %v516_v23, %v512_v26  ;;  %v764_v39 = vrot.slane %v534_v28, 4 }
 0x28c   :  { %v462_v24 = vpop.permute.xlu1 %461  ;;  %v466_v25 = vpop.permute.xlu0 %465  ;;  %v533_v40 = vpack.c.bf16 %v529_v29, %v529_v29 }
 0x28e   :  { %v763_v53 = vrot.slane %v533_v40, 4 }
 0x290   :  { %v464_v30 = vpop.permute.xlu1 %463  ;;  %v1652_v31 = vpop.permute.xlu0 %537 }
 0x291   :  { %v474_v32 = vsel %vm471_vm3, %v462_v24, %v464_v30  ;;  %v473_v48 = vsel %vm471_vm3, %v464_v30, %v466_v25 }
 0x292   :  { %v493_v35 = vmul.f32 %v483_v27, %v474_v32  ;;  %v494_v58 = vmul.f32 %v487_v44, %v473_v48  ;;  %v553_v27 = vrot.slane %v1644_v16, %v552_v9  ;;  %v565_v48 = vrot.slane %v1664_v36, %v552_v9 }
 0x294   :  { %v497_v41 = vpack.c.bf16 %v493_v35, %v493_v35  ;;  %v468_v42 = vpop.permute.xlu1 %467  ;;  %v544_v43 = vpop.permute.xlu0 %543  ;;  %v498_v23 = vpack.c.bf16 %v494_v58, %v494_v58 }
 0x295   :  { %v475_v46 = vsel %vm471_vm3, %v468_v42, %v462_v24  ;;  %v472_v52 = vsel %vm471_vm3, %v466_v25, %v468_v42 }
 0x296   :  { %v492_v49 = vmul.f32 %v479_v38, %v475_v46  ;;  %v797_v50 = vsel %vm88_vm0, %v497_v41, %v764_v39  ;;  %v495_v63 = vmul.f32 %v491_v45, %v472_v52  ;;  %v549_v38 = vsel %vm545_vm5, %v544_v43, %v1652_v31 }
 0x297   :  { %872 = vmatprep.subr.bf16.mxu0 %v797_v50  ;;  %v557_v41 = vrot.slane %v1633_v11, %v552_v9  ;;  %v566_v42 = vmul.f32 %v553_v27, %v549_v38 }
 0x298   :  { %v496_v54 = vpack.c.bf16 %v492_v49, %v492_v49  ;;  %v505_v55 = vpop.permute.xlu1 %504  ;;  %v1678_v56 = vpop.permute.xlu0 %613  ;;  %v499_v24 = vpack.c.bf16 %v495_v63, %v495_v63  ;;  %v561_v49 = vrot.slane %v1659_v33, %v552_v9 }
 0x299   :  { %v509_v59 = vsel %vm508_vm2, %v505_v55, %v507_v13  ;;  %v510_v62 = vsel %vm508_vm2, %v503_v8, %v505_v55  ;;  %v590_v13 = vrot.slane %v1644_v16, %v589_v57  ;;  %v602_v55 = vrot.slane %v1664_v36, %v589_v57 }
 0x29a   :  { %v531_v2 = vmul.f32 %v524_v47, %v510_v62  ;;  %v532_v3 = vmul.f32 %v528_v51, %v509_v59  ;;  %v793_v4 = vsel %vm88_vm0, %v496_v54, %v763_v53  ;;  %v626_v47 = vsub.s32 4, %v1625_v5 }
 0x29b   :  { %873 = vmatpush1.bf16.msra.mxu0 %v793_v4  ;;  %v570_v59 = vpack.c.bf16 %v566_v42, %v566_v42 }
 0x29c   :  { %v535_v10 = vpack.c.bf16 %v531_v2, %v531_v2  ;;  %v536_v12 = vpack.c.bf16 %v532_v3, %v532_v3  ;;  %v577_v17 = vpop.permute.xlu1 %576  ;;  %v542_v20 = vpop.permute.xlu0 %541  ;;  %v631_v2 = vrot.slane %v1633_v11, %v626_v47 }
 0x29d   :  { %v585_v8 = vsel %vm582_vm4, %v1637_v14, %v577_v17  ;;  %v546_v51 = vsel %vm545_vm5, %v542_v20, %v544_v43 }
 0x29e   :  { %v765_v25 = vrot.slane %v535_v10, 4  ;;  %v766_v26 = vrot.slane %v536_v12, 4  ;;  %v604_v28 = vmul.f32 %v594_v15, %v585_v8  ;;  %v569_v3 = vmul.f32 %v565_v48, %v546_v51 }
 0x29f   :  { %v635_v15 = vrot.slane %v1659_v33, %v626_v47 }
 0x2a0   :  { %v581_v29 = vpop.permute.xlu1 %580  ;;  %v1695_v30 = vpop.permute.xlu0 %617  ;;  %v805_v32 = vsel %vm88_vm0, %v499_v24, %v766_v26  ;;  %v801_v35 = vsel %vm88_vm0, %v498_v23, %v765_v25  ;;  %v608_v44 = vpack.c.bf16 %v604_v28, %v604_v28  ;;  %v627_v25 = vrot.slane %v1644_v16, %v626_v47 }
 0x2a1   :  { %v586_v39 = vsel %vm582_vm4, %v581_v29, %v1637_v14  ;;  %913 = vmatprep.subr.bf16.mxu1 %v805_v32  ;;  %v598_v14 = vrot.slane %v1659_v33, %v589_v57  ;;  %v639_v26 = vrot.slane %v1664_v36, %v626_v47 }
 0x2a2   :  { %v603_v40 = vmul.f32 %v590_v13, %v586_v39  ;;  %914 = vmatpush1.bf16.msra.mxu1 %v801_v35  ;;  %v772_v62 = vrot.slane %v608_v44, 4 }
 0x2a4   :  { %v607_v45 = vpack.c.bf16 %v603_v40, %v603_v40  ;;  %v540_v46 = vpop.permute.xlu1 %539  ;;  %v1717_v54 = vpop.permute.xlu0 %689 }
 0x2a5   :  { %v548_v50 = vsel %vm545_vm5, %v1652_v31, %v540_v46  ;;  %v547_v52 = vsel %vm545_vm5, %v540_v46, %v542_v20 }
 0x2a6   :  { %v567_v53 = vmul.f32 %v557_v41, %v548_v50  ;;  %v771_v58 = vrot.slane %v607_v45, 4  ;;  %v568_v4 = vmul.f32 %v561_v49, %v547_v52  ;;  %v1742_v45 = vsub.s32 6, %v1625_v5 }
 0x2a7   :  { %v454_v49 = vpack.c.bf16 %v1573_v61, %v1573_v61 }
 0x2a8   :  { %v571_v63 = vpack.c.bf16 %v567_v53, %v567_v53  ;;  %v579_v31 = vpop.permute.xlu1 %578  ;;  %v809_v20 = vsel %vm88_vm0, %v570_v59, %v771_v58  ;;  %v1729_v23 = vpop.permute.xlu0 %650  ;;  %v572_v27 = vpack.c.bf16 %v568_v4, %v568_v4  ;;  %v663_v53 = vsub.s32 5, %v1625_v5 }
 0x2a9   :  { %v583_v43 = vsel %vm582_vm4, %v579_v31, %v581_v29  ;;  %v584_v9 = vsel %vm582_vm4, %v577_v17, %v579_v31  ;;  %v573_v17 = vpack.c.bf16 %v569_v3, %v569_v3  ;;  %v456_v31 = vpack.c.bf16 %v1577_v0, %v1577_v0 }
 0x2aa   :  { %v605_v10 = vmul.f32 %v598_v14, %v584_v9  ;;  %v606_v12 = vmul.f32 %v602_v55, %v583_v43  ;;  %v813_v57 = vsel %vm88_vm0, %v571_v63, %v772_v62  ;;  %v453_v63 = vpack.c.bf16 %v1571_v60, %v1571_v60 }
 0x2ab   :  { %874 = vmatprep.subr.bf16.mxu0 %v813_v57  ;;  %v701_v4 = vrot.slane %v1644_v16, %v1742_v45  ;;  %v455_v43 = vpack.c.bf16 %v1581_v1, %v1581_v1  ;;  %v664_v9 = vrot.slane %v1644_v16, %v663_v53 }
 0x2ac   :  { %v609_v8 = vpack.c.bf16 %v605_v10, %v605_v10  ;;  %v610_v13 = vpack.c.bf16 %v606_v12, %v606_v12  ;;  %v616_v24 = vpop.permute.xlu1 %615  ;;  %875 = vmatpush1.bf16.msra.mxu0 %v809_v20  ;;  %v649_v14 = vpop.permute.xlu0 %648 }
 0x2ad   :  { %v620_v28 = vsel %vm619_vm6, %v616_v24, %v1695_v30  ;;  %v621_v29 = vsel %vm619_vm6, %v1678_v56, %v616_v24  ;;  %v659_v0 = vsel %vm656_vm8, %v649_v14, %v1729_v23 }
 0x2ae   :  { %v773_v32 = vrot.slane %v609_v8, 4  ;;  %v774_v35 = vrot.slane %v610_v13, 4  ;;  %v641_v38 = vmul.f32 %v631_v2, %v621_v29  ;;  %v642_v39 = vmul.f32 %v635_v15, %v620_v28 }
 0x2af   :  { %v668_v13 = vrot.slane %v1633_v11, %v663_v53  ;;  %v677_v24 = vmul.f32 %v664_v9, %v659_v0  ;;  %v676_v28 = vrot.slane %v1664_v36, %v663_v53  ;;  %v672_v29 = vrot.slane %v1659_v33, %v663_v53 }
 0x2b0   :  { %v645_v40 = vpack.c.bf16 %v641_v38, %v641_v38  ;;  %v612_v41 = vpop.permute.xlu1 %611  ;;  %v821_v42 = vsel %vm88_vm0, %v573_v17, %v774_v35  ;;  %v817_v44 = vsel %vm88_vm0, %v572_v27, %v773_v32  ;;  %v646_v46 = vpack.c.bf16 %v642_v39, %v642_v39  ;;  %v655_v10 = vpop.permute.xlu0 %654 }
 0x2b1   :  { %v622_v47 = vsel %vm619_vm6, %v612_v41, %v1678_v56  ;;  %v623_v48 = vsel %vm619_vm6, %v1695_v30, %v612_v41  ;;  %915 = vmatprep.subr.bf16.mxu1 %v821_v42  ;;  %v705_v56 = vrot.slane %v1633_v11, %v1742_v45  ;;  %v737_v27 = vsub.s32 7, %v1625_v5 }
 0x2b2   :  { %v780_v50 = vrot.slane %v645_v40, 4  ;;  %v640_v51 = vmul.f32 %v627_v25, %v622_v47  ;;  %v643_v52 = vmul.f32 %v639_v26, %v623_v48  ;;  %916 = vmatpush1.bf16.msra.mxu1 %v817_v44  ;;  %v781_v62 = vrot.slane %v646_v46, 4 }
 0x2b3   :  { %v709_v35 = vrot.slane %v1659_v33, %v1742_v45  ;;  %v660_v38 = vsel %vm656_vm8, %v655_v10, %v649_v14  ;;  %v713_v5 = vrot.slane %v1664_v36, %v1742_v45  ;;  %v681_v44 = vpack.c.bf16 %v677_v24, %v677_v24  ;;  %v1824_v24 = vpop.f32.mrb[4].mxu0 }
 0x2b4   :  { %v644_v55 = vpack.c.bf16 %v640_v51, %v640_v51  ;;  %v647_v58 = vpack.c.bf16 %v643_v52, %v643_v52  ;;  %v688_v59 = vpop.permute.xlu1 %687  ;;  %v829_v30 = vsel %vm88_vm0, %v454_v49, %v780_v50  ;;  %v833_v1 = vsel %vm88_vm0, %v455_v43, %v781_v62  ;;  %v725_v39 = vpop.permute.xlu0 %724 }
 0x2b5   :  { %v695_v61 = vsel %vm693_vm7, %v688_v59, %v1717_v54  ;;  %876 = vmatprep.subr.bf16.mxu0 %v829_v30  ;;  %v738_v48 = vrot.slane %v1644_v16, %v737_v27  ;;  %v680_v49 = vmul.f32 %v676_v28, %v660_v38  ;;  %v742_v62 = vrot.slane %v1633_v11, %v737_v27 }
 0x2b6   :  { %v779_v2 = vrot.slane %v644_v55, 4  ;;  %v782_v3 = vrot.slane %v647_v58, 4  ;;  %v715_v12 = vmul.f32 %v705_v56, %v695_v61  ;;  %v750_v55 = vrot.slane %v1664_v36, %v737_v27 }
 0x2b7   :  { %v684_v61 = vpack.c.bf16 %v680_v49, %v680_v49 }
 0x2b8   :  { %v686_v57 = vpop.permute.xlu1 %685  ;;  %v825_v60 = vsel %vm88_vm0, %v453_v63, %v779_v2  ;;  %v837_v15 = vsel %vm88_vm0, %v456_v31, %v782_v3  ;;  %v719_v25 = vpack.c.bf16 %v715_v12, %v715_v12  ;;  %v729_v56 = vpop.permute.xlu0 %728 }
 0x2b9   :  { %v696_v20 = vsel %vm693_vm7, %v686_v57, %v688_v59  ;;  %877 = vmatpush1.bf16.msra.mxu0 %v825_v60  ;;  %917 = vmatprep.subr.bf16.mxu1 %v837_v15 }
 0x2ba   :  { %v714_v8 = vmul.f32 %v701_v4, %v696_v20  ;;  %918 = vmatpush1.bf16.msra.mxu1 %v833_v1  ;;  %v788_v46 = vrot.slane %v719_v25, 4  ;;  %v1826_v25 = vpop.f32.mrb[4].mxu1 }
 0x2bc   :  { %v718_v26 = vpack.c.bf16 %v714_v8, %v714_v8  ;;  %v653_v17 = vpop.permute.xlu1 %652 }
 0x2bd   :  { %v658_v32 = vsel %vm656_vm8, %v1729_v23, %v653_v17  ;;  %v657_v40 = vsel %vm656_vm8, %v653_v17, %v655_v10  ;;  %v1830_v17 = vpop.f32.mrb[5].mxu1 }
 0x2be   :  { %v678_v41 = vmul.f32 %v668_v13, %v658_v32  ;;  %v787_v42 = vrot.slane %v718_v26, 4  ;;  %v679_v50 = vmul.f32 %v672_v29, %v657_v40  ;;  %v1828_v26 = vpop.f32.mrb[5].mxu0 }
 0x2bf   :  { %v274_v28 = vadd.f32 %v1828_v26, %v1824_v24  ;;  %v298_v29 = vmul.f32 %v1828_v26, %v1828_v26  ;;  %v1838_v32 = vpop.f32.mrb[6].mxu0 }
 0x2c0   :  { %v682_v23 = vpack.c.bf16 %v678_v41, %v678_v41  ;;  %v692_v47 = vpop.permute.xlu1 %691  ;;  %v841_v58 = vsel %vm88_vm0, %v681_v44, %v787_v42  ;;  %v683_v63 = vpack.c.bf16 %v679_v50, %v679_v50  ;;  %v301_v38 = vmul.f32 %v1838_v32, %v1838_v32 }
 0x2c1   :  { %v694_v14 = vsel %vm693_vm7, %v1717_v54, %v692_v47  ;;  %v697_v51 = vsel %vm693_vm7, %v692_v47, %v686_v57  ;;  %v746_v54 = vrot.slane %v1659_v33, %v737_v27  ;;  %v297_v27 = vmul.f32 %v1824_v24, %v1824_v24 }
 0x2c2   :  { %v716_v52 = vmul.f32 %v709_v35, %v694_v14  ;;  %v717_v45 = vmul.f32 %v713_v5, %v697_v51  ;;  %v845_v53 = vsel %vm88_vm0, %v682_v23, %v788_v46  ;;  %v1840_v35 = vpop.f32.mrb[6].mxu1  ;;  %v299_v42 = vmul.f32 %v1826_v25, %v1826_v25 }
 0x2c3   :  { %878 = vmatprep.subr.bf16.mxu0 %v845_v53  ;;  %v1846_v40 = vpop.f32.mrb[7].mxu1  ;;  %v303_v44 = vmul.f32 %v1840_v35, %v1840_v35  ;;  %v275_v46 = vadd.f32 %v274_v28, %v1826_v25  ;;  %v314_v47 = vadd.f32 %v298_v29, %v297_v27  ;;  %v300_v14 = vmul.f32 %v1830_v17, %v1830_v17 }
 0x2c4   :  { %v720_v16 = vpack.c.bf16 %v716_v52, %v716_v52  ;;  %v721_v59 = vpack.c.bf16 %v717_v45, %v717_v45  ;;  %v723_v30 = vpop.permute.xlu1 %722  ;;  %879 = vmatpush1.bf16.msra.mxu0 %v841_v58  ;;  %v1866_v45 = vpop.f32.mrb[8].mxu1  ;;  %v304_v53 = vmul.f32 %v1846_v40, %v1846_v40 }
 0x2c5   :  { %v733_v31 = vsel %vm730_vm9, %v723_v30, %v725_v39  ;;  %v734_v36 = vsel %vm730_vm9, %v729_v56, %v723_v30  ;;  %v276_v49 = vadd.f32 %v275_v46, %v1830_v17  ;;  %v315_v51 = vadd.f32 %v314_v47, %v299_v42 }
 0x2c6   :  { %v789_v2 = vrot.slane %v720_v16, 4  ;;  %v790_v3 = vrot.slane %v721_v59, 4  ;;  %v751_v4 = vmul.f32 %v738_v48, %v733_v31  ;;  %v754_v43 = vmul.f32 %v750_v55, %v734_v36  ;;  %v1874_v16 = vpop.f32.mrb[9].mxu1 }
 0x2c7   :  { %v316_v59 = vadd.f32 %v315_v51, %v300_v14  ;;  %v307_v36 = vmul.f32 %v1866_v45, %v1866_v45 }
 0x2c8   :  { %v758_v9 = vpack.c.bf16 %v754_v43, %v754_v43  ;;  %v727_v10 = vpop.permute.xlu1 %726  ;;  %v853_v12 = vsel %vm88_vm0, %v684_v61, %v790_v3  ;;  %v849_v11 = vsel %vm88_vm0, %v683_v63, %v789_v2  ;;  %v755_v60 = vpack.c.bf16 %v751_v4, %v751_v4  ;;  %v220_v61 = vpop.f32.mrb[10].mxu1 }
 0x2c9   :  { %v731_v33 = vsel %vm730_vm9, %v727_v10, %v729_v56  ;;  %v732_v57 = vsel %vm730_vm9, %v725_v39, %v727_v10  ;;  %919 = vmatprep.subr.bf16.mxu1 %v853_v12  ;;  %v1844_v39 = vpop.f32.mrb[7].mxu0  ;;  %v221_v2 = vpop.f32.mrb[11].mxu1  ;;  %v308_v43 = vmul.f32 %v1874_v16, %v1874_v16 }
 0x2ca   :  { %v752_v15 = vmul.f32 %v742_v62, %v732_v57  ;;  %v753_v0 = vmul.f32 %v746_v54, %v731_v33  ;;  %920 = vmatpush1.bf16.msra.mxu1 %v849_v11  ;;  %v861_v8 = vsel %vm88_vm0, %v755_v60, 0  ;;  %v279_v41 = vadd.f32 %v1844_v39, %v1838_v32  ;;  %v1864_v52 = vpop.f32.mrb[8].mxu0 }
 0x2cb   :  { %1391 = vmatprep.subr.msk.bf16.mxu1 %vm88_vm0, %v758_v9  ;;  %v302_v5 = vmul.f32 %v1844_v39, %v1844_v39  ;;  %v305_v58 = vmul.f32 %v1864_v52, %v1864_v52  ;;  %v1872_v56 = vpop.f32.mrb[9].mxu0 }
 0x2cc   :  { %v756_v20 = vpack.c.bf16 %v752_v15, %v752_v15  ;;  %v757_v1 = vpack.c.bf16 %v753_v0, %v753_v0  ;;  %v280_v23 = vadd.f32 %v279_v41, %v1840_v35  ;;  %v284_v30 = vadd.f32 %v1872_v56, %v1864_v52  ;;  %v159_v54 = vpop.f32.mrb[10].mxu0 }
 0x2cd   :  { %v319_v48 = vadd.f32 %v302_v5, %v301_v38  ;;  %v306_v62 = vmul.f32 %v1872_v56, %v1872_v56  ;;  %v160_v31 = vpop.f32.mrb[11].mxu0 }
 0x2ce   :  { %1389 = vmatprep.subr.msk.bf16.mxu0 %vm88_vm0, %v756_v20  ;;  %v867_v13 = vsel %vm88_vm0, %v757_v1, 0  ;;  %v1860_v50 = vadd.f32 %v280_v23, %v1846_v40  ;;  %v285_v4 = vadd.f32 %v284_v30, %v1866_v45 }
 0x2cf   :  { %881 = vmatpush1.bf16.msra.mxu0 %v861_v8  ;;  %922 = vmatpush1.bf16.msra.mxu1 %v867_v13  ;;  %v320_v55 = vadd.f32 %v319_v48, %v303_v44  ;;  %v324_v3 = vadd.f32 %v306_v62, %v305_v58  ;;  %v39_v62 = vld [vmem:[%s2115_s6 + $0x8] sm:$0xff] }
 0x2d0   :  { %v286_v10 = vadd.f32 %v285_v4, %v1874_v16 }
 0x2d1   :  { %v321_v63 = vadd.f32 %v320_v55, %v304_v53  ;;  %v325_v9 = vadd.f32 %v324_v3, %v307_v36  ;;  %v29_v55 = vld [vmem:[%s2114_s5 + $0x8] sm:$0xff] }
 0x2d2   :  { %1390 = vmatmul.mubr.msk.bf16.vlgmr.msra.gmra.mrb[12].mxu0 %vm856_vm10, %v855_v7  ;;  %1392 = vmatmul.mubr.msk.bf16.vlgmr.msra.gmra.mrb[12].mxu1 %vm856_vm10, %v855_v7 }
 0x2d3   :  { %1068 = vmatprep.mubr.bf16.mxu0 %v1468_v6  ;;  %1121 = vmatprep.mubr.bf16.mxu1 %v1468_v6  ;;  %v326_v12 = vadd.f32 %v325_v9, %v308_v43 }
 0x3a5   :  { %v906_v11 = vpop.f32.mrb[12].mxu0  ;;  %v947_v33 = vpop.f32.mrb[12].mxu1 }
 0x3a6   :  { %v960_v57 = vmul.f32 %v906_v11, %v906_v11  ;;  %v908_v60 = vpop.f32.mrb[13].mxu0  ;;  %v949_v15 = vpop.f32.mrb[13].mxu1  ;;  %v962_v0 = vmul.f32 %v947_v33, %v947_v33 }
 0x3a7   :  { %v954_v20 = vadd.f32 %v908_v60, %v906_v11  ;;  %v961_v1 = vmul.f32 %v908_v60, %v908_v60  ;;  %v910_v8 = vpop.f32.mrb[14].mxu0  ;;  %v951_v13 = vpop.f32.mrb[14].mxu1  ;;  %v963_v41 = vmul.f32 %v949_v15, %v949_v15 }
 0x3a8   :  { %v911_v7 = vpop.f32.mrb[15].mxu0  ;;  %v952_v27 = vpop.f32.mrb[15].mxu1 }
 0x3a9   :  { %v955_v28 = vadd.f32 %v954_v20, %v947_v33  ;;  %v964_v29 = vadd.f32 %v961_v1, %v960_v57 }
 0x3ab   :  { %v956_v38 = vadd.f32 %v955_v28, %v949_v15  ;;  %v965_v5 = vadd.f32 %v964_v29, %v962_v0 }
 0x3ad   :  { %957 = vadd.xlane.f32.xlu1 %v956_v38  ;;  %v966_v42 = vadd.f32 %v965_v5, %v963_v41 }
 0x3af   :  { %967 = vadd.xlane.f32.xlu0 %v966_v42 }
 0x43a   :  { %v958_v44 = vpop.xlane.xlu1 %957 }
 0x43b   :  { %v959_v46 = vmul.f32 0.001953125, %v958_v44 }
 0x43c   :  { %v968_v23 = vpop.xlane.xlu0 %967 }
 0x43d   :  { %v970_v47 = vmul.f32 %v959_v46, %v959_v46  ;;  %v969_v48 = vmul.f32 0.001953125, %v968_v23 }
 0x43f   :  { %v971_v14 = vsub.f32 %v969_v48, %v970_v47 }
 0x441   :  { %v972_v51 = vmax.f32 %v971_v14, 0.0 }
 0x443   :  { %v973_v53 = vadd.f32 1e-05, %v972_v51 }
 0x445   :  { %1426 = vrsqrt.f32 %v973_v53 }
 0x44f   :  { %v1427_v58 = vpop.eup %1426 }
 0x450   :  { %v975_v30 = vmul.f32 %v1427_v58, %v29_v55 }
 0x452   :  { %980 = vperm.xlu0 %1414, %v975_v30   ;;  %v976_v54 = vmul.f32 %v975_v30, %v959_v46 }
 0x454   :  { %v977_v61 = vsub.f32 %v39_v62, %v976_v54 }
 0x456   :  { %989 = vperm.xlu1 %1413, %v977_v61  }
 0x471   :  { %277 = vadd.xlane.f32.xlu0 %v276_v49 }
 0x475   :  { %327 = vadd.xlane.f32.xlu0 %v326_v12 }
 0x47a   :  { %272 = vadd.xlane.f32.xlu1 %v1559_v34 }
 0x47e   :  { %282 = vadd.xlane.f32.xlu1 %v1860_v50 }
 0x482   :  { %287 = vadd.xlane.f32.xlu1 %v286_v10 }
 0x486   :  { %312 = vadd.xlane.f32.xlu1 %v1563_v37 }
 0x48a   :  { %317 = vadd.xlane.f32.xlu1 %v316_v59 }
 0x48e   :  { %322 = vadd.xlane.f32.xlu1 %v321_v63 }
 0x4d1   :  { %v981_v31 = vpop.permute.xlu0 %980 }
 0x4d2   :  { %v983_v36 = vmul.f32 %v981_v31, %v906_v11  ;;  %v984_v2 = vmul.f32 %v981_v31, %v908_v60  ;;  %v985_v3 = vmul.f32 %v981_v31, %v947_v33  ;;  %v986_v4 = vmul.f32 %v981_v31, %v949_v15  ;;  %v1422_v11 = vld [vmem:[%s2112_s3] sm:$0xff]   ;;  %v1423_v33 = vld [vmem:[%s2112_s3 + $0x8] sm:$0xff]  }
 0x4d5   :  { %v990_v43 = vpop.permute.xlu1 %989 }
 0x4d6   :  { %v992_v9 = vadd.f32 %v990_v43, %v983_v36  ;;  %v993_v57 = vadd.f32 %v990_v43, %v984_v2  ;;  %v994_v0 = vadd.f32 %v990_v43, %v985_v3  ;;  %v995_v49 = vadd.f32 %v990_v43, %v986_v4 }
 0x4d8   :  { %v997_v12 = vmax.f32 %v993_v57, 0.0  ;;  %v999_v20 = vmax.f32 %v995_v49, 0.0  ;;  %v996_v34 = vmax.f32 %v992_v9, 0.0  ;;  %v998_v1 = vmax.f32 %v994_v0, 0.0 }
 0x4da   :  { %v1005_v50 = vpack.c.bf16 %v997_v12, %v997_v12  ;;  %v1007_v10 = vpack.c.bf16 %v999_v20, %v999_v20  ;;  %v1004_v8 = vpack.c.bf16 %v996_v34, %v996_v34  ;;  %v1006_v37 = vpack.c.bf16 %v998_v1, %v998_v1 }
 0x4dc   :  { %1395 = vmatprep.subr.msk.bf16.mxu0 %vm88_vm0, %v1005_v50  ;;  %1398 = vmatprep.subr.msk.bf16.mxu1 %vm88_vm0, %v1007_v10  ;;  %v1025_v59 = vsel %vm88_vm0, %v1004_v8, 0  ;;  %v1031_v63 = vsel %vm88_vm0, %v1006_v37, 0 }
 0x4dd   :  { %1037 = vmatpush1.bf16.msra.mxu0 %v1025_v59  ;;  %1090 = vmatpush1.bf16.msra.mxu1 %v1031_v63 }
 0x4e0   :  { %1396 = vmatmul.mubr.msk.bf16.vlgmr.msra.gmra.mrb[16].mxu0 %vm78_vm1, %v1422_v11  ;;  %1399 = vmatmul.mubr.msk.bf16.vlgmr.msra.gmra.mrb[16].mxu1 %vm78_vm1, %v1422_v11 }
 0x4e1   :  { %1078 = vmatprep.mubr.bf16.mxu0 %v1468_v6  ;;  %1131 = vmatprep.mubr.bf16.mxu1 %v1468_v6 }
 0x4e8   :  { %1397 = vmatmul.mubr.msk.bf16.gmra.mrb[20].mxu0 %vm78_vm1, %v1423_v33  ;;  %1400 = vmatmul.mubr.msk.bf16.gmra.mrb[20].mxu1 %vm78_vm1, %v1423_v33 }
 0x4fe   :  { %v278_v53 = vpop.xlane.xlu0 %277 }
 0x4ff   :  { %v1950_v9 = vmul.f32 0.001953125, %v278_v53 }
 0x507   :  { %v273_v60 = vpop.xlane.xlu1 %272 }
 0x508   :  { %v1931_v47 = vmul.f32 0.001953125, %v273_v60 }
 0x50a   :  { %v333_v57 = vmul.f32 %v1931_v47, %v1931_v47 }
 0x50b   :  { %v283_v15 = vpop.xlane.xlu1 %282 }
 0x50c   :  { %v1954_v0 = vmul.f32 0.001953125, %v283_v15 }
 0x50f   :  { %v288_v13 = vpop.xlane.xlu1 %287 }
 0x510   :  { %v1956_v49 = vmul.f32 0.001953125, %v288_v13 }
 0x513   :  { %v313_v7 = vpop.xlane.xlu1 %312 }
 0x514   :  { %v329_v54 = vmul.f32 0.001953125, %v313_v7 }
 0x516   :  { %v337_v8 = vsub.f32 %v329_v54, %v333_v57  ;;  %v328_v54 = vpop.xlane.xlu0 %327 }
 0x517   :  { %v318_v27 = vpop.xlane.xlu1 %317 }
 0x518   :  { %v330_v37 = vmul.f32 0.001953125, %v318_v27 }
 0x51b   :  { %v323_v36 = vpop.xlane.xlu1 %322 }
 0x51c   :  { %v331_v59 = vmul.f32 0.001953125, %v323_v36 }
 0x5b3   :  { %v1911_v28 = vpop.f32.mrb[16].mxu0  ;;  %v1913_v29 = vpop.f32.mrb[16].mxu1 }
 0x5b4   :  { %v1166_v6 = vmul.f32 %v1911_v28, %v1911_v28  ;;  %v1917_v38 = vpop.f32.mrb[17].mxu0  ;;  %v1919_v41 = vpop.f32.mrb[17].mxu1  ;;  %v1168_v46 = vmul.f32 %v1913_v29, %v1913_v29 }
 0x5b5   :  { %v1142_v5 = vadd.f32 %v1917_v38, %v1911_v28  ;;  %v1167_v42 = vmul.f32 %v1917_v38, %v1917_v38  ;;  %v1925_v44 = vpop.f32.mrb[18].mxu0  ;;  %v1929_v23 = vpop.f32.mrb[18].mxu1  ;;  %v1169_v31 = vmul.f32 %v1919_v41, %v1919_v41 }
 0x5b6   :  { %v1170_v48 = vmul.f32 %v1925_v44, %v1925_v44  ;;  %v1935_v14 = vpop.f32.mrb[19].mxu0  ;;  %v1937_v51 = vpop.f32.mrb[19].mxu1  ;;  %v1172_v61 = vmul.f32 %v1929_v23, %v1929_v23 }
 0x5b7   :  { %v1147_v55 = vadd.f32 %v1935_v14, %v1925_v44  ;;  %v1171_v58 = vmul.f32 %v1935_v14, %v1935_v14  ;;  %v1143_v30 = vadd.f32 %v1142_v5, %v1913_v29  ;;  %v1182_v62 = vadd.f32 %v1167_v42, %v1166_v6 }
 0x5b8   :  { %v1173_v50 = vmul.f32 %v1937_v51, %v1937_v51  ;;  %v334_v6 = vmul.f32 %v1950_v9, %v1950_v9  ;;  %v335_v5 = vmul.f32 %v1954_v0, %v1954_v0 }
 0x5b9   :  { %v1144_v2 = vadd.f32 %v1143_v30, %v1919_v41  ;;  %v1148_v3 = vadd.f32 %v1147_v55, %v1929_v23  ;;  %v1183_v4 = vadd.f32 %v1182_v62, %v1168_v46  ;;  %v1187_v43 = vadd.f32 %v1171_v58, %v1170_v48 }
 0x5ba   :  { %v336_v55 = vmul.f32 %v1956_v49, %v1956_v49  ;;  %v339_v36 = vsub.f32 %v331_v59, %v335_v5 }
 0x5bb   :  { %1145 = vadd.xlane.f32.xlu1 %v1144_v2  ;;  %v1958_v12 = vpop.f32.mrb[20].mxu0  ;;  %v1149_v20 = vadd.f32 %v1148_v3, %v1937_v51  ;;  %v1961_v34 = vpop.f32.mrb[20].mxu1  ;;  %v1184_v1 = vadd.f32 %v1183_v4, %v1169_v31  ;;  %v1188_v10 = vadd.f32 %v1187_v43, %v1172_v61  ;;  %v341_v61 = vmax.f32 %v337_v8, 0.0 }
 0x5bc   :  { %v1174_v63 = vmul.f32 %v1958_v12, %v1958_v12  ;;  %v1967_v11 = vpop.f32.mrb[21].mxu0  ;;  %v1969_v33 = vpop.f32.mrb[21].mxu1  ;;  %v1176_v48 = vmul.f32 %v1961_v34, %v1961_v34  ;;  %v338_v31 = vsub.f32 %v330_v37, %v334_v6 }
 0x5bd   :  { %v1152_v60 = vadd.f32 %v1967_v11, %v1958_v12  ;;  %v1175_v15 = vmul.f32 %v1967_v11, %v1967_v11  ;;  %1150 = vadd.xlane.f32.xlu0 %v1149_v20  ;;  %v1975_v13 = vpop.f32.mrb[22].mxu0  ;;  %v1977_v7 = vpop.f32.mrb[22].mxu1  ;;  %v1189_v27 = vadd.f32 %v1188_v10, %v1173_v50  ;;  %v1177_v20 = vmul.f32 %v1969_v33, %v1969_v33 }
 0x5be   :  { %v1178_v42 = vmul.f32 %v1975_v13, %v1975_v13  ;;  %v1985_v46 = vpop.f32.mrb[23].mxu0  ;;  %v1989_v53 = vpop.f32.mrb[23].mxu1  ;;  %v1180_v4 = vmul.f32 %v1977_v7, %v1977_v7  ;;  %v332_v50 = vmul.f32 0.001953125, %v328_v54  ;;  %v342_v59 = vmax.f32 %v338_v31, 0.0  ;;  %v36_v31 = vld [vmem:[%s2114_s5 + $0x40] sm:$0xff] }
 0x5bf   :  { %v1157_v58 = vadd.f32 %v1985_v46, %v1975_v13  ;;  %v1179_v30 = vmul.f32 %v1985_v46, %v1985_v46  ;;  %1185 = vadd.xlane.f32.xlu1 %v1184_v1  ;;  %v1153_v62 = vadd.f32 %v1152_v60, %v1961_v34  ;;  %v1192_v2 = vadd.f32 %v1175_v15, %v1174_v63 }
 0x5c0   :  { %v1181_v10 = vmul.f32 %v1989_v53, %v1989_v53  ;;  %v340_v60 = vsub.f32 %v332_v50, %v336_v55  ;;  %v345_v15 = vadd.f32 1e-05, %v341_v61  ;;  %v346_v5 = vadd.f32 1e-05, %v342_v59 }
 0x5c1   :  { %v1197_v3 = vadd.f32 %v1179_v30, %v1178_v42  ;;  %1190 = vadd.xlane.f32.xlu0 %v1189_v27  ;;  %v1154_v43 = vadd.f32 %v1153_v62, %v1969_v33  ;;  %v1158_v57 = vadd.f32 %v1157_v58, %v1977_v7  ;;  %v1193_v1 = vadd.f32 %v1192_v2, %v1176_v48  ;;  %v34_v62 = vld [vmem:[%s2114_s5 + $0x30] sm:$0xff] }
 0x5c2   :  { %v343_v27 = vmax.f32 %v339_v36, 0.0  ;;  %v344_v42 = vmax.f32 %v340_v60, 0.0  ;;  %1428 = vrsqrt.f32 %v345_v15  ;;  %v35_v36 = vld [vmem:[%s2114_s5 + $0x38] sm:$0xff] }
 0x5c3   :  { %1155 = vadd.xlane.f32.xlu1 %v1154_v43  ;;  %v1159_v8 = vadd.f32 %v1158_v57, %v1989_v53  ;;  %v1198_v37 = vadd.f32 %v1197_v3, %v1180_v4  ;;  %v1194_v63 = vadd.f32 %v1193_v1, %v1177_v20  ;;  %1430 = vrsqrt.f32 %v346_v5  ;;  %v37_v43 = vld [vmem:[%s2114_s5 + $0x48] sm:$0xff]  ;;  %v44_v1 = vld [vmem:[%s2115_s6 + $0x30] sm:$0xff] }
 0x5c4   :  { %v347_v48 = vadd.f32 1e-05, %v343_v27  ;;  %v348_v58 = vadd.f32 1e-05, %v344_v42 }
 0x5c5   :  { %1160 = vadd.xlane.f32.xlu0 %v1159_v8  ;;  %v1199_v6 = vadd.f32 %v1198_v37, %v1181_v10  ;;  %v45_v10 = vld [vmem:[%s2115_s6 + $0x38] sm:$0xff] }
 0x5c6   :  { %1432 = vrsqrt.f32 %v347_v48 }
 0x5c7   :  { %1195 = vadd.xlane.f32.xlu1 %v1194_v63  ;;  %1434 = vrsqrt.f32 %v348_v58 }
 0x5c9   :  { %1200 = vadd.xlane.f32.xlu0 %v1199_v6 }
 0x5cc   :  { %v1429_v30 = vpop.eup %1428 }
 0x5cd   :  { %v1431_v55 = vpop.eup %1430  ;;  %v353_v54 = vmul.f32 %v1429_v30, %v34_v62 }
 0x5ce   :  { %v354_v3 = vmul.f32 %v1431_v55, %v35_v36 }
 0x5cf   :  { %v357_v57 = vmul.f32 %v353_v54, %v1931_v47  ;;  %v46_v47 = vld [vmem:[%s2115_s6 + $0x40] sm:$0xff] }
 0x5d0   :  { %v1433_v61 = vpop.eup %1432  ;;  %v358_v50 = vmul.f32 %v354_v3, %v1950_v9  ;;  %v47_v9 = vld [vmem:[%s2115_s6 + $0x48] sm:$0xff] }
 0x5d1   :  { %v355_v2 = vmul.f32 %v1433_v61, %v36_v31  ;;  %v1435_v4 = vpop.eup %1434  ;;  %v361_v8 = vsub.f32 %v44_v1, %v357_v57 }
 0x5d2   :  { %v356_v20 = vmul.f32 %v1435_v4, %v37_v43  ;;  %v362_v63 = vsub.f32 %v45_v10, %v358_v50 }
 0x5d3   :  { %v359_v37 = vmul.f32 %v355_v2, %v1954_v0 }
 0x5d4   :  { %v360_v59 = vmul.f32 %v356_v20, %v1956_v49 }
 0x5d5   :  { %v363_v60 = vsub.f32 %v46_v47, %v359_v37 }
 0x5d6   :  { %v364_v15 = vsub.f32 %v47_v9, %v360_v59 }
 0x5d8   :  { %367 = vperm.xlu1 %1413, %v353_v54  }
 0x5dc   :  { %377 = vperm.xlu1 %1413, %v355_v2  }
 0x5df   :  { %372 = vperm.xlu0 %1414, %v354_v3  }
 0x5e0   :  { %382 = vperm.xlu1 %1413, %v356_v20  }
 0x5e3   :  { %403 = vperm.xlu0 %1414, %v361_v8  }
 0x5e4   :  { %408 = vperm.xlu1 %1413, %v362_v63  }
 0x5e7   :  { %413 = vperm.xlu0 %1414, %v363_v60  }
 0x5e8   :  { %418 = vperm.xlu1 %1413, %v364_v15  }
 0x648   :  { %v1146_v27 = vpop.xlane.xlu1 %1145 }
 0x649   :  { %v1162_v6 = vmul.f32 0.001953125, %v1146_v27  ;;  %v30_v27 = vld [vmem:[%s2114_s5 + $0x10] sm:$0xff] }
 0x64a   :  { %v1151_v0 = vpop.xlane.xlu0 %1150 }
 0x64b   :  { %v1163_v5 = vmul.f32 0.001953125, %v1151_v0  ;;  %v1206_v42 = vmul.f32 %v1162_v6, %v1162_v6 }
 0x64c   :  { %v1186_v49 = vpop.xlane.xlu1 %1185 }
 0x64d   :  { %v1202_v48 = vmul.f32 0.001953125, %v1186_v49  ;;  %v1207_v30 = vmul.f32 %v1163_v5, %v1163_v5  ;;  %v31_v49 = vld [vmem:[%s2114_s5 + $0x18] sm:$0xff] }
 0x64e   :  { %v1191_v58 = vpop.xlane.xlu0 %1190 }
 0x64f   :  { %v1210_v62 = vsub.f32 %v1202_v48, %v1206_v42  ;;  %v1203_v55 = vmul.f32 0.001953125, %v1191_v58  ;;  %v40_v58 = vld [vmem:[%s2115_s6 + $0x10] sm:$0xff] }
 0x650   :  { %v1156_v54 = vpop.xlane.xlu1 %1155 }
 0x651   :  { %v1214_v61 = vmax.f32 %v1210_v62, 0.0  ;;  %v1211_v31 = vsub.f32 %v1203_v55, %v1207_v30  ;;  %v1164_v36 = vmul.f32 0.001953125, %v1156_v54  ;;  %v41_v55 = vld [vmem:[%s2115_s6 + $0x18] sm:$0xff] }
 0x652   :  { %v1161_v2 = vpop.xlane.xlu0 %1160 }
 0x653   :  { %v1218_v3 = vadd.f32 1e-05, %v1214_v61  ;;  %v1215_v4 = vmax.f32 %v1211_v31, 0.0  ;;  %v1165_v43 = vmul.f32 0.001953125, %v1161_v2  ;;  %v1208_v1 = vmul.f32 %v1164_v36, %v1164_v36  ;;  %v32_v31 = vld [vmem:[%s2114_s5 + $0x20] sm:$0xff] }
 0x654   :  { %v1196_v57 = vpop.xlane.xlu1 %1195 }
 0x655   :  { %1436 = vrsqrt.f32 %v1218_v3  ;;  %v1219_v20 = vadd.f32 1e-05, %v1215_v4  ;;  %v1204_v50 = vmul.f32 0.001953125, %v1196_v57  ;;  %v1209_v8 = vmul.f32 %v1165_v43, %v1165_v43  ;;  %v33_v4 = vld [vmem:[%s2114_s5 + $0x28] sm:$0xff]  ;;  %s1477_s5 = smov [#allocation2]  }
 0x656   :  { %v1201_v10 = vpop.xlane.xlu0 %1200 }
 0x657   :  { %1438 = vrsqrt.f32 %v1219_v20  ;;  %v1212_v37 = vsub.f32 %v1204_v50, %v1208_v1  ;;  %v1205_v59 = vmul.f32 0.001953125, %v1201_v10  ;;  %v42_v20 = vld [vmem:[%s2115_s6 + $0x20] sm:$0xff]  ;;  %v43_v50 = vld [vmem:[%s2115_s6 + $0x28] sm:$0xff]  ;;  %s1363_s6 = sshll.u32 %s1477_s5, 4  ;;  %s1364_s6 = int_to_ptr.vmem [resolvable:$true] %s1363_s6 }
 0x658   :  { %s1444_s16 = scalar_lea.vmem %s1364_s6, 2048  ;;  %p1449_p1 = scmp.lt.s32.totalorder %s1364_s6, %s1364_s6 }
 0x659   :  { %v1216_v63 = vmax.f32 %v1212_v37, 0.0  ;;  %v1213_v47 = vsub.f32 %v1205_v59, %v1209_v8  ;;  %v368_v59 = vpop.permute.xlu1 %367  ;;  %p1445_p0 = scmp.ne.s32.totalorder %s1364_s6, %s1444_s16  ;;  %p1450_p2 = scmp.lt.s32.totalorder %s1444_s16, %s1444_s16 }
 0x65b   :  { %v1220_v9 = vadd.f32 1e-05, %v1216_v63  ;;  %v1217_v60 = vmax.f32 %v1213_v47, 0.0  ;;  %p1451_p3 = por %p1450_p2, %p1449_p1 }
 0x65d   :  { %1440 = vrsqrt.f32 %v1220_v9  ;;  %v1221_v15 = vadd.f32 1e-05, %v1217_v60  ;;  %v378_v63 = vpop.permute.xlu1 %377  ;;  %p1452_p4 = pnand %p1451_p3, %p1445_p0 }
 0x65e   :  { %v373_v47 = vpop.permute.xlu0 %372 }
 0x65f   :  { %v1437_v0 = vpop.eup %1436  ;;  %1442 = vrsqrt.f32 %v1221_v15 }
 0x660   :  { %v1226_v42 = vmul.f32 %v1437_v0, %v30_v27  ;;  %v385_v0 = vmul.f32 %v368_v59, %v1541_v18  ;;  %v390_v18 = vmul.f32 %v373_v47, %v1828_v26 }
 0x661   :  { %v1439_v48 = vpop.eup %1438  ;;  %v383_v9 = vpop.permute.xlu1 %382 }
 0x662   :  { %1240 = vperm.xlu0 %1414, %v1226_v42   ;;  %v1227_v30 = vmul.f32 %v1439_v48, %v31_v49  ;;  %v1230_v62 = vmul.f32 %v1226_v42, %v1162_v6  ;;  %v404_v60 = vpop.permute.xlu0 %403  ;;  %v387_v49 = vmul.f32 %v368_v59, %v1543_v19  ;;  %v388_v42 = vmul.f32 %v368_v59, %v1549_v22 }
 0x663   :  { %v392_v19 = vmul.f32 %v373_v47, %v1830_v17  ;;  %v397_v22 = vmul.f32 %v383_v9, %v1864_v52 }
 0x664   :  { %1245 = vperm.xlu1 %1413, %v1227_v30   ;;  %v1234_v54 = vsub.f32 %v40_v58, %v1230_v62  ;;  %v1231_v61 = vmul.f32 %v1227_v30, %v1163_v5  ;;  %v394_v58 = vmul.f32 %v378_v63, %v1844_v39  ;;  %v395_v30 = vmul.f32 %v378_v63, %v1840_v35 }
 0x665   :  { %v409_v15 = vpop.permute.xlu1 %408  ;;  %v396_v62 = vmul.f32 %v378_v63, %v1846_v40  ;;  %v400_v39 = vmul.f32 %v383_v9, %v1874_v16  ;;  %v421_v35 = vadd.f32 %v404_v60, %v385_v0  ;;  %v423_v40 = vadd.f32 %v404_v60, %v387_v49 }
 0x666   :  { %1276 = vperm.xlu0 %1414, %v1234_v54   ;;  %v1235_v2 = vsub.f32 %v41_v55, %v1231_v61  ;;  %v414_v27 = vpop.permute.xlu0 %413  ;;  %v389_v55 = vmul.f32 %v373_v47, %v1824_v24  ;;  %v398_v61 = vmul.f32 %v383_v9, %v1872_v56 }
 0x667   :  { %v1441_v3 = vpop.eup %1440  ;;  %v430_v0 = vadd.f32 %v414_v27, %v394_v58 }
 0x668   :  { %1281 = vperm.xlu1 %1413, %v1235_v2   ;;  %v1228_v6 = vmul.f32 %v1441_v3, %v32_v31  ;;  %v424_v2 = vadd.f32 %v404_v60, %v388_v42  ;;  %v425_v52 = vadd.f32 %v409_v15, %v389_v55 }
 0x669   :  { %v1443_v57 = vpop.eup %1442  ;;  %v2063_v48 = vpop.permute.xlu1 %418 }
 0x66a   :  { %1250 = vperm.xlu0 %1414, %v1228_v6   ;;  %v1229_v5 = vmul.f32 %v1443_v57, %v33_v4  ;;  %v1232_v1 = vmul.f32 %v1228_v6, %v1164_v36  ;;  %v386_v36 = vmul.f32 %v368_v59, %v1547_v21  ;;  %v391_v21 = vmul.f32 %v373_v47, %v1826_v25 }
 0x66b   :  { %v426_v4 = vadd.f32 %v409_v15, %v390_v18  ;;  %v428_v6 = vadd.f32 %v409_v15, %v392_v19  ;;  %v433_v58 = vadd.f32 %v2063_v48, %v397_v22 }
 0x66c   :  { %1255 = vperm.xlu1 %1413, %v1229_v5   ;;  %v1236_v10 = vsub.f32 %v42_v20, %v1232_v1  ;;  %v1233_v8 = vmul.f32 %v1229_v5, %v1165_v43  ;;  %v393_v43 = vmul.f32 %v378_v63, %v1838_v32  ;;  %v399_v32 = vmul.f32 %v383_v9, %v1866_v45 }
 0x66d   :  { %v422_v31 = vadd.f32 %v404_v60, %v386_v36  ;;  %v427_v56 = vadd.f32 %v409_v15, %v391_v21  ;;  %v431_v36 = vadd.f32 %v414_v27, %v395_v30 }
 0x66e   :  { %1286 = vperm.xlu0 %1414, %v1236_v10   ;;  %v1237_v37 = vsub.f32 %v43_v50, %v1233_v8  ;;  %v429_v15 = vadd.f32 %v414_v27, %v393_v43  ;;  %v435_v30 = vadd.f32 %v2063_v48, %v399_v32 }
 0x670   :  { %1291 = vperm.xlu1 %1413, %v1237_v37  }
 0x6e1   :  { %v1241_v54 = vpop.permute.xlu0 %1240 }
 0x6e2   :  { %v1258_v26 = vmul.f32 %v1241_v54, %v1911_v28  ;;  %v1259_v25 = vmul.f32 %v1241_v54, %v1917_v38  ;;  %v1260_v17 = vmul.f32 %v1241_v54, %v1913_v29  ;;  %v1261_v3 = vmul.f32 %v1241_v54, %v1919_v41 }
 0x6e3   :  { %v1246_v24 = vpop.permute.xlu1 %1245 }
 0x6e4   :  { %v1262_v1 = vmul.f32 %v1246_v24, %v1925_v44  ;;  %v1263_v50 = vmul.f32 %v1246_v24, %v1935_v14  ;;  %v1264_v28 = vmul.f32 %v1246_v24, %v1929_v23  ;;  %v1265_v38 = vmul.f32 %v1246_v24, %v1937_v51 }
 0x6e5   :  { %v1277_v45 = vpop.permute.xlu0 %1276  ;;  %v432_v44 = vadd.f32 %v414_v27, %v396_v62  ;;  %v434_v27 = vadd.f32 %v2063_v48, %v398_v61  ;;  %v436_v62 = vadd.f32 %v2063_v48, %v400_v39 }
 0x6e6   :  { %v1294_v57 = vadd.f32 %v1277_v45, %v1258_v26  ;;  %v1295_v16 = vadd.f32 %v1277_v45, %v1259_v25  ;;  %v1296_v20 = vadd.f32 %v1277_v45, %v1260_v17  ;;  %v1297_v5 = vadd.f32 %v1277_v45, %v1261_v3 }
 0x6e7   :  { %v1282_v29 = vpop.permute.xlu1 %1281 }
 0x6e8   :  { %v1326_v10 = vadd.f32 %v1294_v57, %v421_v35  ;;  %v1327_v41 = vadd.f32 %v1295_v16, %v422_v31  ;;  %v1328_v8 = vadd.f32 %v1296_v20, %v423_v40  ;;  %v1329_v37 = vadd.f32 %v1297_v5, %v424_v2 }
 0x6e9   :  { %v1298_v59 = vadd.f32 %v1282_v29, %v1262_v1  ;;  %v1299_v63 = vadd.f32 %v1282_v29, %v1263_v50  ;;  %v1300_v47 = vadd.f32 %v1282_v29, %v1264_v28  ;;  %v1301_v9 = vadd.f32 %v1282_v29, %v1265_v38  ;;  %v1251_v60 = vpop.permute.xlu0 %1250 }
 0x6ea   :  { %1342 = vst [vmem:[#allocation2] sm:$0xff] %v1326_v10  ;;  %1343 = vst [vmem:[#allocation2 + $0x8] sm:$0xff] %v1327_v41  ;;  %v1266_v55 = vmul.f32 %v1251_v60, %v1958_v12  ;;  %v1267_v18 = vmul.f32 %v1251_v60, %v1967_v11  ;;  %v1268_v21 = vmul.f32 %v1251_v60, %v1961_v34 }
 0x6eb   :  { %1344 = vst [vmem:[#allocation2 + $0x10] sm:$0xff] %v1328_v8  ;;  %1345 = vst [vmem:[#allocation2 + $0x18] sm:$0xff] %v1329_v37  ;;  %v1330_v23 = vadd.f32 %v1298_v59, %v425_v52  ;;  %v1331_v14 = vadd.f32 %v1299_v63, %v426_v4  ;;  %v1332_v51 = vadd.f32 %v1300_v47, %v427_v56  ;;  %v1256_v42 = vpop.permute.xlu1 %1255 }
 0x6ec   :  { %v1333_v49 = vadd.f32 %v1301_v9, %v428_v6  ;;  %v1269_v43 = vmul.f32 %v1251_v60, %v1969_v33  ;;  %v1270_v34 = vmul.f32 %v1256_v42, %v1975_v13  ;;  %v1271_v33 = vmul.f32 %v1256_v42, %v1985_v46 }
 0x6ed   :  { %1346 = vst [vmem:[#allocation2 + $0x20] sm:$0xff] %v1330_v23  ;;  %1347 = vst [vmem:[#allocation2 + $0x28] sm:$0xff] %v1331_v14  ;;  %v1287_v19 = vpop.permute.xlu0 %1286  ;;  %v1272_v22 = vmul.f32 %v1256_v42, %v1977_v7  ;;  %v1273_v61 = vmul.f32 %v1256_v42, %v1989_v53 }
 0x6ee   :  { %1348 = vst [vmem:[#allocation2 + $0x30] sm:$0xff] %v1332_v51  ;;  %1349 = vst [vmem:[#allocation2 + $0x38] sm:$0xff] %v1333_v49  ;;  %v1302_v12 = vadd.f32 %v1287_v19, %v1266_v55  ;;  %v1303_v54 = vadd.f32 %v1287_v19, %v1267_v18  ;;  %v1304_v11 = vadd.f32 %v1287_v19, %v1268_v21 }
 0x6ef   :  { %v1305_v35 = vadd.f32 %v1287_v19, %v1269_v43  ;;  %v1292_v32 = vpop.permute.xlu1 %1291 }
 0x6f0   :  { %v1334_v48 = vadd.f32 %v1302_v12, %v429_v15  ;;  %v1335_v39 = vadd.f32 %v1303_v54, %v430_v0  ;;  %v1336_v31 = vadd.f32 %v1304_v11, %v431_v36  ;;  %v1306_v2 = vadd.f32 %v1292_v32, %v1270_v34 }
 0x6f1   :  { %v1337_v40 = vadd.f32 %v1305_v35, %v432_v44  ;;  %v1307_v24 = vadd.f32 %v1292_v32, %v1271_v33  ;;  %v1308_v26 = vadd.f32 %v1292_v32, %v1272_v22  ;;  %v1309_v25 = vadd.f32 %v1292_v32, %v1273_v61 }
 0x6f2   :  { %1350 = vst [vmem:[#allocation2 + $0x40] sm:$0xff] %v1334_v48  ;;  %1351 = vst [vmem:[#allocation2 + $0x48] sm:$0xff] %v1335_v39  ;;  %v1338_v13 = vadd.f32 %v1306_v2, %v433_v58 }
 0x6f3   :  { %1352 = vst [vmem:[#allocation2 + $0x50] sm:$0xff] %v1336_v31  ;;  %1353 = vst [vmem:[#allocation2 + $0x58] sm:$0xff] %v1337_v40  ;;  %v1339_v7 = vadd.f32 %v1307_v24, %v434_v27  ;;  %v1340_v46 = vadd.f32 %v1308_v26, %v435_v30  ;;  %v1341_v53 = vadd.f32 %v1309_v25, %v436_v62 }
 0x6f4   :  { %1354 = vst [vmem:[#allocation2 + $0x60] sm:$0xff] %v1338_v13 }
 0x6f5   :  { %1355 = vst [vmem:[#allocation2 + $0x68] sm:$0xff] %v1339_v7  ;;  %1356 = vst [vmem:[#allocation2 + $0x70] sm:$0xff] %v1340_v46 }
 0x6f6   :  { %1357 = vst [vmem:[#allocation2 + $0x78] sm:$0xff] %v1341_v53 }
 0x6f7   :  { %1455 = shalt.err (!%p1452_p4)
}
 0x6f8   :  { %s1456_s19 = scalar_lea.hbm %s2116_s7, 2048 }
 0x6f9   :  { %p1457_p5 = scmp.ne.s32.totalorder %s2116_s7, %s1456_s19  ;;  %p1460_p6 = scmp.lt.u32.totalorder %s1456_s19, %s2116_s7 }
 0x6fb   :  { %p1462_p7 = pnand %p1460_p6, %p1457_p5 }
 0x6fd   :  { %1465 = shalt.err (!%p1462_p7)
}
 0x6fe   :  { %s1478_s23 = smov 512   ;;  %s1479_s24 = smov 32  }
 0x6ff   :  { %1369 = dma.vmem_to_hbm [thread:$0]  %s1364_s6, 2048, %s2116_s7, [#allocation3], %s1478_s23, %s1478_s23, %s1479_s24  }
 0x700   :  { %1466 = dma.done.wait [#allocation3], 2048  }
 0x701   :  { %1467 = vsyncadd [#allocation3], 4294965248 }
 0x702   :  { %1373 = vsyncpa [#allocation3], 1 }

</bundles_post_ra>
